<compile_context>
chip_gen: v6e
topology: v6e:2x2x1
jax: 0.10.0
libtpu: 0.0.40
codegen_flags: <defaults>
</compile_context>

<pallas_src>
import jax
import jax.numpy as jnp
from jax import lax
from jax.experimental import pallas as pl
from jax.experimental.pallas import tpu as pltpu

NEG_SLOPE = 0.1
C_PLANES = 50          # E2E planes (from the module __init__)
PAD_MAX = 5            # max padding among featureCNN kernels (k=11 -> pad=5)
FEAT_KS = (3, 7, 11)   # featureCNN1/2/3 kernel sizes


def _leaky(v):
    return jnp.where(v > 0, v, NEG_SLOPE * v)


def _round_up(x, m):
    return ((x + m - 1) // m) * m


# --------------------------------------------------------------------------
# Kernel 1 (grid over T, "arbitrary"): E2E factors + fused max/avg pooling.
#   a[o, r] = sum_w W1[o, w] * x[r, w] + b1[o]
#   b[o, c] = sum_h W2[o, h] * x[h, c] + b2[o]
#   e2e[o, r, c] = leaky(a[o, r] + b[o, c])   (recomputed, not written out)
#   feat[0] = max over (t, o) of e2e ; feat[1] = mean over (t, o)
# --------------------------------------------------------------------------
def e2e_pool_call(x_t, w1, b1, w2, b2):
    T, D, _ = x_t.shape
    C = w1.shape[0]
    # NOTE: torch hardcodes MaxPool3d/AvgPool3d((50*21,1,1)); we generalize to
    # the actual T*C planes so small stand-in shapes work.
    inv_tc = 1.0 / float(T * C)

    def kernel(x_ref, w1_ref, b1_ref, w2_ref, b2_ref, a_ref, b_ref, feat_ref):
        t = pl.program_id(0)
        x = x_ref[0]                                               # (D, D)
        a = lax.dot_general(w1_ref[...], x, (((1,), (1,)), ((), ())),
                            preferred_element_type=jnp.float32) + b1_ref[...]
        b = lax.dot_general(w2_ref[...], x, (((1,), (0,)), ((), ())),
                            preferred_element_type=jnp.float32) + b2_ref[...]
        a_ref[0] = a                                               # (C, D)
        b_ref[0] = b                                               # (C, D)

        e = _leaky(a[:, :, None] + b[:, None, :])                  # (C, D, D)
        e_max = jnp.max(e, axis=0)                                 # (D, D)
        e_sum = jnp.sum(e, axis=0)

        @pl.when(t == 0)
        def _():
            feat_ref[0] = e_max
            feat_ref[1] = e_sum

        @pl.when(t > 0)
        def _():
            feat_ref[0] = jnp.maximum(feat_ref[0], e_max)
            feat_ref[1] = feat_ref[1] + e_sum

        @pl.when(t == pl.num_programs(0) - 1)
        def _():
            feat_ref[1] = feat_ref[1] * inv_tc

    return pl.pallas_call(
        kernel,
        out_shape=(jax.ShapeDtypeStruct((T, C, D), jnp.float32),
                   jax.ShapeDtypeStruct((T, C, D), jnp.float32),
                   jax.ShapeDtypeStruct((2, D, D), jnp.float32)),
        grid=(T,),
        in_specs=[
            pl.BlockSpec((1, D, D), lambda t: (t, 0, 0)),
            pl.BlockSpec((C, D), lambda t: (0, 0)),
            pl.BlockSpec((C, 1), lambda t: (0, 0)),
            pl.BlockSpec((C, D), lambda t: (0, 0)),
            pl.BlockSpec((C, 1), lambda t: (0, 0)),
        ],
        out_specs=(pl.BlockSpec((1, C, D), lambda t: (t, 0, 0)),
                   pl.BlockSpec((1, C, D), lambda t: (t, 0, 0)),
                   pl.BlockSpec((2, D, D), lambda t: (0, 0, 0))),
        compiler_params=pltpu.CompilerParams(
            dimension_semantics=("arbitrary",)),
    )(x_t, w1, b1, w2, b2)


# --------------------------------------------------------------------------
# Kernel 2: featureCNN1/2/3 (Conv2d 2->1, same padding), max-of-3, softmax.
# The padded feature map is lane-padded to a multiple of 128 so the column
# shift is a single native pltpu.roll; the row shift is a static sublane slice.
# Conv weights/biases live in SMEM (scalar reads), so they are real params.
# --------------------------------------------------------------------------
def attn_call(feat_pad, wf_flat, bf, D):
    Rp = feat_pad.shape[1]
    Wp = feat_pad.shape[2]

    def kernel(fp_ref, wf_ref, bf_ref, c1_ref, c2_ref, c3_ref, attn_ref):
        convs = []
        w_off = 0
        for ci, (k, o_ref) in enumerate(zip(FEAT_KS, (c1_ref, c2_ref, c3_ref))):
            p = (k - 1) // 2
            off = PAD_MAX - p
            acc = jnp.zeros((D, Wp), dtype=jnp.float32)
            for ch in range(2):
                for dr in range(k):
                    row_slab = fp_ref[ch, off + dr: off + dr + D, :]   # (D, Wp)
                    for dc in range(k):
                        m = off + dc
                        shifted = (pltpu.roll(row_slab, (Wp - m) % Wp, axis=1)
                                   if m else row_slab)
                        wv = wf_ref[w_off + ch * k * k + dr * k + dc]
                        acc = acc + wv * shifted
            w_off += 2 * k * k
            conv = acc[:, :D] + bf_ref[ci]
            o_ref[...] = conv
            convs.append(conv)

        m3 = jnp.maximum(jnp.maximum(convs[0], convs[1]), convs[2])
        mmax = jnp.max(m3, axis=(0, 1), keepdims=True)
        pexp = jnp.exp(m3 - mmax)
        attn_ref[...] = pexp / jnp.sum(pexp, axis=(0, 1), keepdims=True)

    sds = jax.ShapeDtypeStruct((D, D), jnp.float32)
    return pl.pallas_call(
        kernel,
        out_shape=(sds, sds, sds, sds),
        grid=(1,),
        in_specs=[
            pl.BlockSpec((2, Rp, Wp), lambda i: (0, 0, 0)),
            pl.BlockSpec(memory_space=pltpu.MemorySpace.SMEM),
            pl.BlockSpec(memory_space=pltpu.MemorySpace.SMEM),
        ],
        out_specs=tuple(pl.BlockSpec((D, D), lambda i: (0, 0))
                        for _ in range(4)),
    )(feat_pad, wf_flat, bf)


# --------------------------------------------------------------------------
# Kernel 3 (grid over T, parallel): rebuild attention-weighted e2e tiles from
# the a/b factors into a (C*D, D) VMEM scratch, then do E2N as ONE matmul
# with the wrapper-flattened (C, C*D) weight, plus the N2G temporal branch.
# --------------------------------------------------------------------------
def e2n_call(a_fac, b_col, attn_T, w_e2n_flat, b_e2n, w_n2g, b_n2g):
    T, C, D = a_fac.shape
    K = C * D

    def kernel(a_ref, bcol_ref, attnT_ref, we_ref, be_ref, wg_ref, bg_ref,
               e2n_ref, temp_ref, e_scr):
        attn_t = attnT_ref[...]                     # (D, D): attn_t[w, r] = attn[r, w]

        def fill(c, carry):
            a_row = a_ref[0, pl.ds(c, 1), :]        # (1, D): a[c, r] on lanes
            b_cc = bcol_ref[0, pl.ds(c * D, D), :]  # (D, 1): b[c, w] on sublanes
            e_c = _leaky(a_row + b_cc) * attn_t     # (D, D): e2e[t,c,r,w]*attn[r,w] (w-major)
            start = c * D
            if D % 8 == 0:
                start = pl.multiple_of(start, 8)
            e_scr[pl.ds(start, D), :] = e_c
            return carry

        lax.fori_loop(0, C, fill, 0)

        # E2N: e2n[o, r] = sum_{c,w} W[o, c, w] * e[c, r, w]   (single K=C*D matmul)
        e2n = _leaky(
            lax.dot_general(we_ref[...], e_scr[...], (((1,), (0,)), ((), ())),
                            preferred_element_type=jnp.float32) + be_ref[...])
        e2n_ref[0] = e2n                            # (C, D)

        # N2G: tmp[o] = sum_{p,r} Wn2g[o, p, r] * e2n[p, r]
        # TODO(synk): at real D (1000) this should become a flattened matvec to
        # avoid the (C, C, D) broadcast product; it is tiny at demo sizes.
        prod = wg_ref[...] * e2n[None, :, :]
        temp_ref[0, 0, :] = _leaky(jnp.sum(prod, axis=(1, 2)) + bg_ref[0])

    return pl.pallas_call(
        kernel,
        out_shape=(jax.ShapeDtypeStruct((T, C, D), jnp.float32),
                   jax.ShapeDtypeStruct((T, 1, C), jnp.float32)),
        grid=(T,),
        in_specs=[
            pl.BlockSpec((1, C, D), lambda t: (t, 0, 0)),
            pl.BlockSpec((1, K, 1), lambda t: (t, 0, 0)),
            pl.BlockSpec((D, D), lambda t: (0, 0)),
            pl.BlockSpec((C, K), lambda t: (0, 0)),
            pl.BlockSpec((C, 1), lambda t: (0, 0)),
            pl.BlockSpec((C, C, D), lambda t: (0, 0, 0)),
            pl.BlockSpec((1, C), lambda t: (0, 0)),
        ],
        out_specs=(pl.BlockSpec((1, C, D), lambda t: (t, 0, 0)),
                   pl.BlockSpec((1, 1, C), lambda t: (t, 0, 0))),
        scratch_shapes=[pltpu.VMEM((K, D), jnp.float32)],
        compiler_params=pltpu.CompilerParams(
            dimension_semantics=("parallel",)),
        # TODO(synk): at real D=1000 this kernel needs an extra r-tile grid axis
        # (and pl.Buffered(1) on the resident weight specs for v7x VMEM).
    )(a_fac, b_col, attn_T, w_e2n_flat, b_e2n, w_n2g, b_n2g)


# --------------------------------------------------------------------------
# Kernel 4: batched, lane-dense FC stack over all T*D rows
# (fc1 -> fc2 -> stacked {fc3_Fi, fc3_Fo, fc3_T, fc3_L}), weights in (K, N).
# --------------------------------------------------------------------------
def fc_call(fc_in, w1t, b1, w2t, b2, w3t, b3):
    M, C = fc_in.shape
    H1, H2, H3 = w1t.shape[1], w2t.shape[1], w3t.shape[1]
    tm = 512 if (M % 512 == 0) else M

    def kernel(x_ref, w1_ref, b1_ref, w2_ref, b2_ref, w3_ref, b3_ref, o_ref):
        h = x_ref[...]
        h = _leaky(jnp.dot(h, w1_ref[...],
                           preferred_element_type=jnp.float32) + b1_ref[...])
        h = _leaky(jnp.dot(h, w2_ref[...],
                           preferred_element_type=jnp.float32) + b2_ref[...])
        o_ref[...] = _leaky(jnp.dot(h, w3_ref[...],
                                    preferred_element_type=jnp.float32)
                            + b3_ref[...])

    return pl.pallas_call(
        kernel,
        out_shape=jax.ShapeDtypeStruct((M, H3), jnp.float32),
        grid=(M // tm,),
        in_specs=[
            pl.BlockSpec((tm, C), lambda i: (i, 0)),
            pl.BlockSpec((C, H1), lambda i: (0, 0)),
            pl.BlockSpec((1, H1), lambda i: (0, 0)),
            pl.BlockSpec((H1, H2), lambda i: (0, 0)),
            pl.BlockSpec((1, H2), lambda i: (0, 0)),
            pl.BlockSpec((H2, H3), lambda i: (0, 0)),
            pl.BlockSpec((1, H3), lambda i: (0, 0)),
        ],
        out_specs=pl.BlockSpec((tm, H3), lambda i: (i, 0)),
        compiler_params=pltpu.CompilerParams(
            dimension_semantics=("parallel",)),
    )(fc_in, w1t, b1, w2t, b2, w3t, b3)


# --------------------------------------------------------------------------
# Kernel 5: temporalFC (Linear 50->2, pre-transposed weight) + final weighted
# sums over time (out_Fi/Fo/T use Attn[:,1]; out_L uses Attn[:,0]).
# --------------------------------------------------------------------------
def final_call(temporal_in, w_tfc_t, b_tfc, fc_all):
    T, C = temporal_in.shape
    _, D, H3 = fc_all.shape

    def kernel(tin_ref, wt_ref, bt_ref, fc_ref,
               attn_out_ref, fi_ref, fo_ref, ft_ref, fl_ref):
        A = jnp.dot(tin_ref[...], wt_ref[...],
                    preferred_element_type=jnp.float32) + bt_ref[...]
        attn_out_ref[...] = A                              # (T, 2)
        fc = fc_ref[...]                                   # (T, D, 12)
        w1 = A[:, 1:2][:, :, None]
        w0 = A[:, 0:1][:, :, None]
        s1 = jnp.sum(fc * w1, axis=0)                      # (D, 12)
        s0 = jnp.sum(fc * w0, axis=0)
        fi_ref[...] = s1[:, 0:3]
        fo_ref[...] = s1[:, 3:6]
        ft_ref[...] = s1[:, 6:9]
        fl_ref[...] = s0[:, 9:12]

    sds3 = jax.ShapeDtypeStruct((D, 3), jnp.float32)
    return pl.pallas_call(
        kernel,
        out_shape=(jax.ShapeDtypeStruct((T, 2), jnp.float32),
                   sds3, sds3, sds3, sds3),
    )(temporal_in, w_tfc_t, b_tfc, fc_all)


# --------------------------------------------------------------------------
# Full forward (wrapper glue: reshapes / pads / weight layout prep only)
# --------------------------------------------------------------------------
def multiscale_forward(x, p):
    _, _, D, _, T = x.shape
    C = C_PLANES
    x_t = jnp.transpose(x[0, 0], (2, 0, 1))                # (T, D, D)

    # Stage 1: E2E factors (pre-leaky, bias included) + fused max/avg pooling.
    a_fac, b_fac, feat = e2e_pool_call(
        x_t, p['w1_e2e'], p['b1_e2e'], p['w2_e2e'], p['b2_e2e'])

    # Stage 2: featureCNN convs + max-of-3 + softmax spatial attention.
    Rp = _round_up(D + 2 * PAD_MAX, 8)
    Wp = max(_round_up(D + 2 * PAD_MAX, 128), 128)
    feat_pad = jnp.pad(
        feat, ((0, 0),
               (PAD_MAX, Rp - D - PAD_MAX),
               (PAD_MAX, Wp - D - PAD_MAX)))
    wf_flat = jnp.concatenate([p['wf1'].reshape(-1),
                               p['wf2'].reshape(-1),
                               p['wf3'].reshape(-1)])
    bf = jnp.stack([p['bf1'], p['bf2'], p['bf3']])
    conv1, conv2, conv3, attn = attn_call(feat_pad, wf_flat, bf, D)

    # Stage 3: attention * e2e (recomputed from a/b), E2N, N2G.
    b_col = b_fac.reshape(T, C * D, 1)                     # free wrapper reshape
    w_e2n_flat = p['w_e2n'].reshape(C, C * D)
    e2n_out, temporal_in = e2n_call(
        a_fac, b_col, attn.T, w_e2n_flat, p['b_e2n'], p['w_n2g'], p['b_n2g'])

    # torch `out.view(out.size(2), out.size(1))` on the contiguous (1,C,D,1)
    # tensor is a RAW row-major reshape (not a transpose) -- reproduce exactly.
    fc_in = e2n_out.reshape(T * D, C)

    # Stage 4: batched FC stack (weights pre-transposed to (K, N)).
    fc_all_flat = fc_call(fc_in,
                          p['w_fc1'].T, p['b_fc1'],
                          p['w_fc2'].T, p['b_fc2'],
                          p['w_fc3'].T, p['b_fc3'])        # (T*D, 12)
    H3 = p['w_fc3'].shape[0]

    # Stage 5: temporalFC + final weighted sums over time.
    Attn, out_Fi, out_Fo, out_T, out_L = final_call(
        temporal_in.reshape(T, C), p['w_tfc'].T, p['b_tfc'],
        fc_all_flat.reshape(T, D, H3))

    return (out_Fi, out_Fo, out_T, out_L,
            attn.reshape(1, 1, D, D),
            conv1.reshape(1, 1, D, D),
            conv2.reshape(1, 1, D, D),
            conv3.reshape(1, 1, D, D),
            Attn)


# --------------------------------------------------------------------------
# Deterministic parameter init (shapes from the module __init__)
# --------------------------------------------------------------------------
def init_params(key, D, C=C_PLANES):
    ks = jax.random.split(key, 24)
    s = 0.05
    n = lambda k, shp: (s * jax.random.normal(k, shp)).astype(jnp.float32)
    p = {}
    p['w1_e2e'] = n(ks[0], (C, D))          # Conv2d(1, 50, (1, D)) weight
    p['b1_e2e'] = n(ks[1], (C, 1))
    p['w2_e2e'] = n(ks[2], (C, D))          # Conv2d(1, 50, (D, 1)) weight
    p['b2_e2e'] = n(ks[3], (C, 1))
    p['wf1'] = n(ks[4], (2, 3, 3))          # featureCNN1
    p['bf1'] = n(ks[5], ())
    p['wf2'] = n(ks[6], (2, 7, 7))          # featureCNN2
    p['bf2'] = n(ks[7], ())
    p['wf3'] = n(ks[8], (2, 11, 11))        # featureCNN3
    p['bf3'] = n(ks[9], ())
    p['w_e2n'] = n(ks[10], (C, C, D))       # Conv2d(50, 50, (1, D))
    p['b_e2n'] = n(ks[11], (C, 1))
    p['w_n2g'] = n(ks[12], (C, C, D))       # "Conv1d"(50, 50, (D, 1))
    p['b_n2g'] = n(ks[13], (1, C))
    p['w_tfc'] = n(ks[14], (2, C))          # Linear(50, 2)
    p['b_tfc'] = n(ks[15], (1, 2))
    p['w_fc1'] = n(ks[16], (250, C))        # Linear(50, 250)
    p['b_fc1'] = n(ks[17], (1, 250))
    p['w_fc2'] = n(ks[18], (100, 250))      # Linear(250, 100)
    p['b_fc2'] = n(ks[19], (1, 100))
    p['w_fc3'] = n(ks[20], (12, 100))       # fc3_{Fi,Fo,T,L} stacked
    p['b_fc3'] = n(ks[21], (1, 12))
    return p


if __name__ == "__main__":
    D, T = 16, 4      # small stand-ins for the hardcoded 1000 nodes / 21 windows
    key = jax.random.PRNGKey(0)
    kx, kp = jax.random.split(key)
    x = jax.random.normal(kx, (1, 1, D, D, T), dtype=jnp.float32)
    params = init_params(kp, D)
    outs = multiscale_forward(x, params)
    jax.block_until_ready(outs)
    # TODO(synk): N2G is declared Conv1d but (as in old PyTorch) dispatches as a
    # 2D convolution with a (D,1) kernel on the 4D E2N output; that semantics is
    # what is implemented here.  The torch max/avg pool kernel (50*21) is
    # generalized to the actual T*C planes so small shapes run.
    print("KERNEL_OK")
</pallas_src>

<mosaic_0001>
module attributes {stable_mosaic.version = 11 : i64} {
  func.func @kernel(%arg0: i32, %arg1: memref<1x16x16xf32, #tpu.memory_space<vmem>>, %arg2: memref<50x16xf32, #tpu.memory_space<vmem>>, %arg3: memref<50x1xf32, #tpu.memory_space<vmem>>, %arg4: memref<50x16xf32, #tpu.memory_space<vmem>>, %arg5: memref<50x1xf32, #tpu.memory_space<vmem>>, %arg6: memref<1x50x16xf32, #tpu.memory_space<vmem>>, %arg7: memref<1x50x16xf32, #tpu.memory_space<vmem>>, %arg8: memref<2x16x16xf32, #tpu.memory_space<vmem>>) attributes {dimension_semantics = [#tpu.dimension_semantics<arbitrary>], iteration_bounds = array<i64: 4>, scalar_prefetch = 0 : i64, scratch_operands = 0 : i64, tpu.core_type = #tpu.core_type<tc>, window_params = [{transform_indices = @transform_0, window_bounds = array<i64: 1, 16, 16>}, {pipeline_mode = #tpu.pipeline_mode<synchronous>, transform_indices = @transform_1, window_bounds = array<i64: 50, 16>}, {pipeline_mode = #tpu.pipeline_mode<synchronous>, transform_indices = @transform_2, window_bounds = array<i64: 50, 1>}, {pipeline_mode = #tpu.pipeline_mode<synchronous>, transform_indices = @transform_3, window_bounds = array<i64: 50, 16>}, {pipeline_mode = #tpu.pipeline_mode<synchronous>, transform_indices = @transform_4, window_bounds = array<i64: 50, 1>}, {transform_indices = @transform_5, window_bounds = array<i64: 1, 50, 16>}, {transform_indices = @transform_6, window_bounds = array<i64: 1, 50, 16>}, {pipeline_mode = #tpu.pipeline_mode<synchronous>, transform_indices = @transform_7, window_bounds = array<i64: 2, 16, 16>}]} {
    %c0 = arith.constant 0 : index
    %c0_0 = arith.constant 0 : index
    %c0_1 = arith.constant 0 : index
    %0 = vector.load %arg1[%c0, %c0_0, %c0_1] : memref<1x16x16xf32, #tpu.memory_space<vmem>>, vector<1x16x16xf32>
    %1 = vector.shape_cast %0 : vector<1x16x16xf32> to vector<16x16xf32>
    %c0_2 = arith.constant 0 : index
    %c0_3 = arith.constant 0 : index
    %2 = vector.load %arg2[%c0_2, %c0_3] : memref<50x16xf32, #tpu.memory_space<vmem>>, vector<50x16xf32>
    %cst = arith.constant dense<0.000000e+00> : vector<50x16xf32>
    %3 = tpu.matmul %2, %1, %cst {dimension_numbers = #tpu.dot_dimension_numbers<[1], [1], [0], [0], [0, 0, 1, 0], [], []>} : vector<50x16xf32>, vector<16x16xf32>, vector<50x16xf32> -> vector<50x16xf32>
    %c0_4 = arith.constant 0 : index
    %c0_5 = arith.constant 0 : index
    %4 = vector.load %arg3[%c0_4, %c0_5] : memref<50x1xf32, #tpu.memory_space<vmem>>, vector<50x1xf32>
    %5 = vector.broadcast %4 : vector<50x1xf32> to vector<50x16xf32>
    %6 = arith.addf %3, %5 : vector<50x16xf32>
    %c0_6 = arith.constant 0 : index
    %c0_7 = arith.constant 0 : index
    %7 = vector.load %arg4[%c0_6, %c0_7] : memref<50x16xf32, #tpu.memory_space<vmem>>, vector<50x16xf32>
    %cst_8 = arith.constant dense<0.000000e+00> : vector<50x16xf32>
    %8 = tpu.matmul %7, %1, %cst_8 {dimension_numbers = #tpu.dot_dimension_numbers<[1], [0], [0], [1], [0, 0, 1, 1], [], []>} : vector<50x16xf32>, vector<16x16xf32>, vector<50x16xf32> -> vector<50x16xf32>
    %c0_9 = arith.constant 0 : index
    %c0_10 = arith.constant 0 : index
    %9 = vector.load %arg5[%c0_9, %c0_10] : memref<50x1xf32, #tpu.memory_space<vmem>>, vector<50x1xf32>
    %10 = vector.broadcast %9 : vector<50x1xf32> to vector<50x16xf32>
    %11 = arith.addf %8, %10 : vector<50x16xf32>
    %c0_11 = arith.constant 0 : index
    %c0_12 = arith.constant 0 : index
    %c0_13 = arith.constant 0 : index
    %12 = vector.load %arg6[%c0_11, %c0_12, %c0_13] : memref<1x50x16xf32, #tpu.memory_space<vmem>>, vector<1x50x16xf32>
    %13 = vector.shape_cast %12 : vector<1x50x16xf32> to vector<50x16xf32>
    %14 = vector.shape_cast %6 : vector<50x16xf32> to vector<1x50x16xf32>
    tpu.vector_store %arg6[%c0_11, %c0_12, %c0_13], %14 {strides = array<i32>} : memref<1x50x16xf32, #tpu.memory_space<vmem>>, vector<1x50x16xf32>,
    %c0_14 = arith.constant 0 : index
    %c0_15 = arith.constant 0 : index
    %c0_16 = arith.constant 0 : index
    %15 = vector.load %arg7[%c0_14, %c0_15, %c0_16] : memref<1x50x16xf32, #tpu.memory_space<vmem>>, vector<1x50x16xf32>
    %16 = vector.shape_cast %15 : vector<1x50x16xf32> to vector<50x16xf32>
    %17 = vector.shape_cast %11 : vector<50x16xf32> to vector<1x50x16xf32>
    tpu.vector_store %arg7[%c0_14, %c0_15, %c0_16], %17 {strides = array<i32>} : memref<1x50x16xf32, #tpu.memory_space<vmem>>, vector<1x50x16xf32>,
    %18 = vector.shape_cast %6 : vector<50x16xf32> to vector<50x16x1xf32>
    %19 = vector.shape_cast %11 : vector<50x16xf32> to vector<50x1x16xf32>
    %20 = vector.broadcast %18 : vector<50x16x1xf32> to vector<50x16x16xf32>
    %21 = vector.broadcast %19 : vector<50x1x16xf32> to vector<50x16x16xf32>
    %22 = arith.addf %20, %21 : vector<50x16x16xf32>
    %cst_17 = arith.constant 0.000000e+00 : f32
    %23 = vector.broadcast %cst_17 : f32 to vector<50x16x16xf32>
    %24 = arith.cmpf ogt, %22, %23 : vector<50x16x16xf32>
    %cst_18 = arith.constant 1.000000e-01 : f32
    %25 = vector.broadcast %cst_18 : f32 to vector<50x16x16xf32>
    %26 = arith.mulf %25, %22 : vector<50x16x16xf32>
    %27 = arith.select %24, %22, %26 : vector<50x16x16xi1>, vector<50x16x16xf32>
    %cst_19 = arith.constant dense<0xFF800000> : vector<16x16xf32>
    %28 = vector.multi_reduction <maximumf>, %27, %cst_19 [0] : vector<50x16x16xf32> to vector<16x16xf32>
    %cst_20 = arith.constant dense<0.000000e+00> : vector<16x16xf32>
    %29 = vector.multi_reduction <add>, %27, %cst_20 [0] : vector<50x16x16xf32> to vector<16x16xf32>
    %c0_i32 = arith.constant 0 : i32
    %30 = arith.cmpi eq, %arg0, %c0_i32 : i32
    %31 = arith.extui %30 : i1 to i32
    %c0_i32_21 = arith.constant 0 : i32
    %32 = arith.cmpi ne, %31, %c0_i32_21 : i32
    scf.if %32 {
      %c0_25 = arith.constant 0 : index
      %c0_26 = arith.constant 0 : index
      %c0_27 = arith.constant 0 : index
      %39 = vector.load %arg8[%c0_25, %c0_26, %c0_27] : memref<2x16x16xf32, #tpu.memory_space<vmem>>, vector<1x16x16xf32>
      %40 = vector.shape_cast %39 : vector<1x16x16xf32> to vector<16x16xf32>
      %41 = vector.shape_cast %28 : vector<16x16xf32> to vector<1x16x16xf32>
      tpu.vector_store %arg8[%c0_25, %c0_26, %c0_27], %41 {strides = array<i32>} : memref<2x16x16xf32, #tpu.memory_space<vmem>>, vector<1x16x16xf32>,
      %c1 = arith.constant 1 : index
      %c0_28 = arith.constant 0 : index
      %c0_29 = arith.constant 0 : index
      %42 = vector.load %arg8[%c1, %c0_28, %c0_29] : memref<2x16x16xf32, #tpu.memory_space<vmem>>, vector<1x16x16xf32>
      %43 = vector.shape_cast %42 : vector<1x16x16xf32> to vector<16x16xf32>
      %44 = vector.shape_cast %29 : vector<16x16xf32> to vector<1x16x16xf32>
      tpu.vector_store %arg8[%c1, %c0_28, %c0_29], %44 {strides = array<i32>} : memref<2x16x16xf32, #tpu.memory_space<vmem>>, vector<1x16x16xf32>,
    } else {
    }
    %c0_i32_22 = arith.constant 0 : i32
    %33 = arith.cmpi sgt, %arg0, %c0_i32_22 : i32
    %34 = arith.extui %33 : i1 to i32
    %c0_i32_23 = arith.constant 0 : i32
    %35 = arith.cmpi ne, %34, %c0_i32_23 : i32
    scf.if %35 {
      %c0_25 = arith.constant 0 : index
      %c0_26 = arith.constant 0 : index
      %c0_27 = arith.constant 0 : index
      %39 = vector.load %arg8[%c0_25, %c0_26, %c0_27] : memref<2x16x16xf32, #tpu.memory_space<vmem>>, vector<1x16x16xf32>
      %40 = vector.shape_cast %39 : vector<1x16x16xf32> to vector<16x16xf32>
      %41 = arith.maximumf %40, %28 : vector<16x16xf32>
      %c0_28 = arith.constant 0 : index
      %c0_29 = arith.constant 0 : index
      %c0_30 = arith.constant 0 : index
      %42 = vector.load %arg8[%c0_28, %c0_29, %c0_30] : memref<2x16x16xf32, #tpu.memory_space<vmem>>, vector<1x16x16xf32>
      %43 = vector.shape_cast %42 : vector<1x16x16xf32> to vector<16x16xf32>
      %44 = vector.shape_cast %41 : vector<16x16xf32> to vector<1x16x16xf32>
      tpu.vector_store %arg8[%c0_28, %c0_29, %c0_30], %44 {strides = array<i32>} : memref<2x16x16xf32, #tpu.memory_space<vmem>>, vector<1x16x16xf32>,
      %c1 = arith.constant 1 : index
      %c0_31 = arith.constant 0 : index
      %c0_32 = arith.constant 0 : index
      %45 = vector.load %arg8[%c1, %c0_31, %c0_32] : memref<2x16x16xf32, #tpu.memory_space<vmem>>, vector<1x16x16xf32>
      %46 = vector.shape_cast %45 : vector<1x16x16xf32> to vector<16x16xf32>
      %47 = arith.addf %46, %29 : vector<16x16xf32>
      %c1_33 = arith.constant 1 : index
      %c0_34 = arith.constant 0 : index
      %c0_35 = arith.constant 0 : index
      %48 = vector.load %arg8[%c1_33, %c0_34, %c0_35] : memref<2x16x16xf32, #tpu.memory_space<vmem>>, vector<1x16x16xf32>
      %49 = vector.shape_cast %48 : vector<1x16x16xf32> to vector<16x16xf32>
      %50 = vector.shape_cast %47 : vector<16x16xf32> to vector<1x16x16xf32>
      tpu.vector_store %arg8[%c1_33, %c0_34, %c0_35], %50 {strides = array<i32>} : memref<2x16x16xf32, #tpu.memory_space<vmem>>, vector<1x16x16xf32>,
    } else {
    }
    %c3_i32 = arith.constant 3 : i32
    %36 = arith.cmpi eq, %arg0, %c3_i32 : i32
    %37 = arith.extui %36 : i1 to i32
    %c0_i32_24 = arith.constant 0 : i32
    %38 = arith.cmpi ne, %37, %c0_i32_24 : i32
    scf.if %38 {
      %c1 = arith.constant 1 : index
      %c0_25 = arith.constant 0 : index
      %c0_26 = arith.constant 0 : index
      %39 = vector.load %arg8[%c1, %c0_25, %c0_26] : memref<2x16x16xf32, #tpu.memory_space<vmem>>, vector<1x16x16xf32>
      %40 = vector.shape_cast %39 : vector<1x16x16xf32> to vector<16x16xf32>
      %cst_27 = arith.constant 5.000000e-03 : f32
      %41 = vector.broadcast %cst_27 : f32 to vector<16x16xf32>
      %42 = arith.mulf %40, %41 : vector<16x16xf32>
      %c1_28 = arith.constant 1 : index
      %c0_29 = arith.constant 0 : index
      %c0_30 = arith.constant 0 : index
      %43 = vector.load %arg8[%c1_28, %c0_29, %c0_30] : memref<2x16x16xf32, #tpu.memory_space<vmem>>, vector<1x16x16xf32>
      %44 = vector.shape_cast %43 : vector<1x16x16xf32> to vector<16x16xf32>
      %45 = vector.shape_cast %42 : vector<16x16xf32> to vector<1x16x16xf32>
      tpu.vector_store %arg8[%c1_28, %c0_29, %c0_30], %45 {strides = array<i32>} : memref<2x16x16xf32, #tpu.memory_space<vmem>>, vector<1x16x16xf32>,
    } else {
    }
    return
  }
  func.func @transform_0(%arg0: i32) -> (i32, i32, i32) {
    %c0_i32 = arith.constant 0 : i32
    %c0_i32_0 = arith.constant 0 : i32
    %c0_i32_1 = arith.constant 0 : i32
    return %arg0, %c0_i32, %c0_i32_0 : i32, i32, i32
  }
  func.func @transform_1(%arg0: i32) -> (i32, i32) {
    %c0_i32 = arith.constant 0 : i32
    %c0_i32_0 = arith.constant 0 : i32
    %c0_i32_1 = arith.constant 0 : i32
    return %c0_i32, %c0_i32_0 : i32, i32
  }
  func.func @transform_2(%arg0: i32) -> (i32, i32) {
    %c0_i32 = arith.constant 0 : i32
    %c0_i32_0 = arith.constant 0 : i32
    %c0_i32_1 = arith.constant 0 : i32
    return %c0_i32, %c0_i32_0 : i32, i32
  }
  func.func @transform_3(%arg0: i32) -> (i32, i32) {
    %c0_i32 = arith.constant 0 : i32
    %c0_i32_0 = arith.constant 0 : i32
    %c0_i32_1 = arith.constant 0 : i32
    return %c0_i32, %c0_i32_0 : i32, i32
  }
  func.func @transform_4(%arg0: i32) -> (i32, i32) {
    %c0_i32 = arith.constant 0 : i32
    %c0_i32_0 = arith.constant 0 : i32
    %c0_i32_1 = arith.constant 0 : i32
    return %c0_i32, %c0_i32_0 : i32, i32
  }
  func.func @transform_5(%arg0: i32) -> (i32, i32, i32) {
    %c0_i32 = arith.constant 0 : i32
    %c0_i32_0 = arith.constant 0 : i32
    %c0_i32_1 = arith.constant 0 : i32
    return %arg0, %c0_i32, %c0_i32_0 : i32, i32, i32
  }
  func.func @transform_6(%arg0: i32) -> (i32, i32, i32) {
    %c0_i32 = arith.constant 0 : i32
    %c0_i32_0 = arith.constant 0 : i32
    %c0_i32_1 = arith.constant 0 : i32
    return %arg0, %c0_i32, %c0_i32_0 : i32, i32, i32
  }
  func.func @transform_7(%arg0: i32) -> (i32, i32, i32) {
    %c0_i32 = arith.constant 0 : i32
    %c0_i32_0 = arith.constant 0 : i32
    %c0_i32_1 = arith.constant 0 : i32
    %c0_i32_2 = arith.constant 0 : i32
    return %c0_i32, %c0_i32_0, %c0_i32_1 : i32, i32, i32
  }
}

</mosaic_0001>

<bundles_post_ra>
// kernel: tpu_custom_call.1
= control target key start
LH: loop header
LB: loop body
LE: loop exit
PB: predicated region body
PF: predicated region fallthrough
CT: control target
= control target key end

     0   :  { %13 = vsyncpa [#allocation3], 0  ;;  %s2932_s24 = smov 0   ;;  %s4140_s0 = inlined_call_operand.vmem [shape: f32[4,16,16], index: 0, kind: input, shape index: {}]   ;;  %s4141_s1 = inlined_call_operand.vmem [shape: f32[50,16], index: 1, kind: input, shape index: {}]   ;;  %s4142_s2 = inlined_call_operand.vmem [shape: f32[50,1], index: 2, kind: input, shape index: {}]   ;;  %s4143_s3 = inlined_call_operand.vmem [shape: f32[50,16], index: 3, kind: input, shape index: {}]   ;;  %s4144_s4 = inlined_call_operand.vmem [shape: f32[50,1], index: 4, kind: input, shape index: {}]   ;;  %s4145_s5 = inlined_call_operand.vmem [shape: f32[4,50,16], index: 5, kind: output, shape index: {0}]   ;;  %s4146_s6 = inlined_call_operand.vmem [shape: f32[4,50,16], index: 6, kind: output, shape index: {1}]   ;;  %s4147_s7 = inlined_call_operand.hbm [shape: f32[2,16,16], index: 7, kind: output, shape index: {2}]  }
   0x1 LB: > { %s2938_s25 = sadd.s32 4294967295, %s2883_s24   ;;  %p2728_p0 = scmp.ge.s32.totalorder %s2883_s24, 1  ;;  %s2883_s24 = sphi %s2932_s24, %s19_s24  }
   0x2   : > { %p238_p1 = scmp.lt.s32.totalorder %s2883_s24, 5 }
   0x4   : > { %p239_p2 = pnand %p2728_p0, %p238_p1 }
   0x6   : > { %242 = sbr.rel (%p239_p2) target bundleno = 592 (0x250), region = 40 }
   0xb   : > { %p275_p3 = scmp.lt.s32.totalorder %s2938_s25, 3  ;;  %v2885_v0 = vmov 0.0   ;;  %vm2886_vm0 = vmmov 0   ;;  %v2887_v1 = vmov 0   ;;  %vm341_vm1 = vcmask 130048   ;;  %v299_v2 = vld [vmem:[%s4142_s2] sm:$0xff] }
   0xc   : > { %2775 = vmatprep.subr.mxu0 %v2885_v0  ;;  %2800 = vmatprep.subr.mxu1 %v2885_v0  ;;  %v300_v5 = vld [vmem:[%s4142_s2 + $0x8] sm:$0xff]  ;;  %v469_v6 = vld [vmem:[%s4143_s3] sm:$0xff]  ;;  %v301_v7 = vld [vmem:[%s4142_s2 + $0x10] sm:$0xff]  ;;  %v654_v37 = vlaneseq  ;;  %v2888_v38 = vmov 1966171168   ;;  %vm645_vm2 = vcmask 123904  }
   0xd   : > { %s2946_s26 = scalar_select %p275_p3, %s2938_s25, 3  ;;  %2804 = vmatprep.mubr.msk.f32.mxu1 %vm2886_vm0, %v2885_v0  ;;  %2779 = vmatprep.mubr.msk.f32.mxu0 %vm2886_vm0, %v2885_v0  ;;  %v303_v8 = vld [vmem:[%s4142_s2 + $0x20] sm:$0xff]  ;;  %v470_v10 = vld [vmem:[%s4143_s3 + $0x8] sm:$0xff]  ;;  %v302_v11 = vld [vmem:[%s4142_s2 + $0x18] sm:$0xff]  ;;  %v1213_v39 = vunpack.c.l.s4 %v2888_v38 }
   0xe   : > { %2847 = vset.pattern.permute.xlu0 %v2887_v1  ;;  %2848 = vset.pattern.permute.xlu1 %v2887_v1  ;;  %v292_v9 = vld [vmem:[%s4141_s1] sm:$0xff]  ;;  %v305_v12 = vld [vmem:[%s4142_s2 + $0x30] sm:$0x3]  ;;  %v293_v13 = vld [vmem:[%s4141_s1 + $0x8] sm:$0xff]  ;;  %v655_v42 = vshrl.u32 %v654_v37, 7  ;;  %p2749_p4 = scmp.ne.s32.totalorder %s2938_s25, 0 }
   0xf   : > { %s2756_s27 = sshll.u32 %s2946_s26, 4  ;;  %308 = vperm.xlu0 %2847, %v299_v2   ;;  %318 = vperm.xlu1 %2848, %v301_v7   ;;  %v471_v14 = vld [vmem:[%s4143_s3 + $0x10] sm:$0xff]  ;;  %v304_v15 = vld [vmem:[%s4142_s2 + $0x28] sm:$0xff]  ;;  %v472_v18 = vld [vmem:[%s4143_s3 + $0x18] sm:$0xff]  ;;  %v1214_v43 = vunpack.c.0.s8 %v1213_v39 }
  0x10   : > { %s279_s9 = scalar_lea.vmem %s4140_s0, %s2756_s27  ;;  %v477_v16 = vld [vmem:[%s4144_s4 + $0x8] sm:$0xff]  ;;  %v294_v17 = vld [vmem:[%s4141_s1 + $0x10] sm:$0xff]  ;;  %v476_v19 = vld [vmem:[%s4144_s4] sm:$0xff]  ;;  %s2825_s27 = smul.u32 56, %s2946_s26  ;;  %v3100_v50 = vsub.s32 0, %v655_v42  ;;  %v3112_v57 = vsub.s32 1, %v655_v42 }
  0x11   : > { %v291_v3 = vld [vmem:[%s279_s9 + $0x8] sm:$0xff]  ;;  %v290_v4 = vld [vmem:[%s279_s9] sm:$0xff]  ;;  %v479_v20 = vld [vmem:[%s4144_s4 + $0x18] sm:$0xff]  ;;  %v3093_v46 = vsub.s32 %v1214_v43, %v655_v42  ;;  %v3115_v61 = vsub.s32 2, %v655_v42  ;;  %v3117_v62 = vsub.s32 3, %v655_v42  ;;  %v3136_v7 = vsub.s32 6, %v655_v42 }
  0x12   : > { %2776 = vmatpush3.xpose.msk.msra.mxu0 %vm341_vm1, %v291_v3  ;;  %2801 = vmatpush3.msra.mxu1 %v291_v3  ;;  %v295_v21 = vld [vmem:[%s4141_s1 + $0x18] sm:$0xff]  ;;  %v473_v22 = vld [vmem:[%s4143_s3 + $0x20] sm:$0xff]  ;;  %v478_v23 = vld [vmem:[%s4144_s4 + $0x10] sm:$0xff]  ;;  %s3098_s30 = scalar_lea.vmem %s4146_s6, %s2825_s27  ;;  %s3108_s9 = scalar_lea.vmem %s4145_s5, %s2825_s27  ;;  %v3132_v3 = vsub.s32 4, %v655_v42 }
  0x13   : > { %2802 = vmatprep.subr.mxu1 %v2885_v0  ;;  %2777 = vmatprep.subr.mxu0 %v2885_v0  ;;  %v481_v24 = vld [vmem:[%s4144_s4 + $0x28] sm:$0xff]  ;;  %v296_v25 = vld [vmem:[%s4141_s1 + $0x20] sm:$0xff]  ;;  %v475_v29 = vld [vmem:[%s4143_s3 + $0x30] sm:$0x3] }
  0x14   : > { %2803 = vmatpush3.msra.mxu1 %v290_v4  ;;  %313 = vperm.xlu0 %2847, %v300_v5   ;;  %v474_v26 = vld [vmem:[%s4143_s3 + $0x28] sm:$0xff]  ;;  %v480_v27 = vld [vmem:[%s4144_s4 + $0x20] sm:$0xff]  ;;  %v482_v30 = vld [vmem:[%s4144_s4 + $0x30] sm:$0x3] }
  0x15   : > { %2805 = vmatmul.mubr.msk.f32.vlgmr.msra.gmra.mxu1 %vm341_vm1, %v469_v6  ;;  %323 = vperm.xlu1 %2848, %v302_v11   ;;  %v297_v28 = vld [vmem:[%s4141_s1 + $0x28] sm:$0xff]  ;;  %v298_v31 = vld [vmem:[%s4141_s1 + $0x30] sm:$0x3] }
  0x16   : > { %2778 = vmatpush3.xpose.msk.msra.mxu0 %vm341_vm1, %v290_v4  ;;  %2807 = vmatprep.mubr.msk.f32.mxu1 %vm2886_vm0, %v2885_v0  ;;  %v3134_v4 = vsub.s32 5, %v655_v42 }
  0x18   : > { %328 = vperm.xlu0 %2847, %v303_v8   ;;  %v3138_v8 = vsub.s32 7, %v655_v42 }
  0x19   : > { %2780 = vmatmul.mubr.msk.f32.vlgmr.msra.gmra.mxu0 %vm341_vm1, %v292_v9  ;;  %2808 = vmatmul.mubr.msk.f32.gmra.mxu1 %vm341_vm1, %v470_v10 }
  0x1a   : > { %2782 = vmatprep.mubr.msk.f32.mxu0 %vm2886_vm0, %v2885_v0  ;;  %2810 = vmatprep.mubr.msk.f32.mxu1 %vm2886_vm0, %v2885_v0 }
  0x1b   : > { %333 = vperm.xlu1 %2848, %v304_v15  }
  0x1c   : > { %338 = vperm.xlu0 %2847, %v305_v12  }
  0x1d   : > { %2783 = vmatmul.mubr.msk.f32.gmra.mxu0 %vm341_vm1, %v293_v13  ;;  %2811 = vmatmul.mubr.msk.f32.gmra.mxu1 %vm341_vm1, %v471_v14 }
  0x1e   : > { %2785 = vmatprep.mubr.msk.f32.mxu0 %vm2886_vm0, %v2885_v0  ;;  %2813 = vmatprep.mubr.msk.f32.mxu1 %vm2886_vm0, %v2885_v0 }
  0x1f   : > { %485 = vperm.xlu1 %2848, %v476_v19  }
  0x20   : > { %490 = vperm.xlu0 %2847, %v477_v16  }
  0x21   : > { %2786 = vmatmul.mubr.msk.f32.gmra.mxu0 %vm341_vm1, %v294_v17  ;;  %2814 = vmatmul.mubr.msk.f32.gmra.mxu1 %vm341_vm1, %v472_v18 }
  0x22   : > { %2788 = vmatprep.mubr.msk.f32.mxu0 %vm2886_vm0, %v2885_v0  ;;  %2816 = vmatprep.mubr.msk.f32.mxu1 %vm2886_vm0, %v2885_v0 }
  0x23   : > { %495 = vperm.xlu1 %2848, %v478_v23  }
  0x24   : > { %500 = vperm.xlu0 %2847, %v479_v20  }
  0x25   : > { %2789 = vmatmul.mubr.msk.f32.gmra.mxu0 %vm341_vm1, %v295_v21  ;;  %2817 = vmatmul.mubr.msk.f32.gmra.mxu1 %vm341_vm1, %v473_v22 }
  0x26   : > { %2791 = vmatprep.mubr.msk.f32.mxu0 %vm2886_vm0, %v2885_v0  ;;  %2819 = vmatprep.mubr.msk.f32.mxu1 %vm2886_vm0, %v2885_v0 }
  0x27   : > { %505 = vperm.xlu1 %2848, %v480_v27  }
  0x28   : > { %510 = vperm.xlu0 %2847, %v481_v24  }
  0x29   : > { %2792 = vmatmul.mubr.msk.f32.gmra.mxu0 %vm341_vm1, %v296_v25  ;;  %2820 = vmatmul.mubr.msk.f32.gmra.mxu1 %vm341_vm1, %v474_v26 }
  0x2a   : > { %2794 = vmatprep.mubr.msk.f32.mxu0 %vm2886_vm0, %v2885_v0  ;;  %2822 = vmatprep.mubr.msk.f32.mxu1 %vm2886_vm0, %v2885_v0 }
  0x2b   : > { %515 = vperm.xlu1 %2848, %v482_v30  }
  0x2d   : > { %2795 = vmatmul.mubr.msk.f32.gmra.mxu0 %vm341_vm1, %v297_v28  ;;  %2823 = vmatmul.mubr.msk.f32.gmra.mxu1 %vm341_vm1, %v475_v29 }
  0x2e   : > { %2797 = vmatprep.mubr.msk.f32.mxu0 %vm2886_vm0, %v2885_v0 }
  0x31   : > { %2798 = vmatmul.mubr.msk.f32.gmra.mxu0 %vm341_vm1, %v298_v31 }
  0x8a   : > { %v309_v32 = vpop.permute.xlu0 %308  ;;  %v3082_v33 = vpop.permute.xlu1 %318 }
  0x8f   : > { %v314_v34 = vpop.permute.xlu0 %313 }
  0x90   : > { %v3084_v35 = vpop.permute.xlu1 %323 }
  0x93   : > { %v3086_v36 = vpop.permute.xlu0 %328 }
  0x96   : > { %v3088_v40 = vpop.permute.xlu1 %333 }
  0x97   : > { %v3090_v41 = vpop.permute.xlu0 %338 }
  0x9a   : > { %v486_v45 = vpop.permute.xlu1 %485 }
  0x9b   : > { %v491_v49 = vpop.permute.xlu0 %490 }
  0x9e   : > { %v496_v12 = vpop.permute.xlu1 %495 }
  0x9f   : > { %v501_v19 = vpop.permute.xlu0 %500 }
  0xd5   : > { %v605_v44 = vpop.f32.mrf.mxu1 }
  0xd6   : > { %v606_v47 = vadd.f32 %v605_v44, %v486_v45 }
  0xd7   : > { %v2806_v48 = vpop.f32.mrf.mxu1 }
  0xd8   : > { %647 = vst.msk [vmem:[%s3098_s30] sm:$0xff] %vm341_vm1, %v606_v47  ;;  %v1211_v51 = vcombine.high %v606_v47, %v606_v47  ;;  %v1218_v52 = vrot.slane %v606_v47, %v3093_v46  ;;  %v506_v48 = vpop.permute.xlu1 %505 }
  0xd9   : > { %v435_v53 = vpop.f32.mrf.mxu0  ;;  %v610_v54 = vpop.f32.mrf.mxu1 }
  0xda   : > { %v436_v55 = vadd.f32 %v435_v53, %v309_v32  ;;  %v3110_v56 = vadd.f32 %v610_v54, %v491_v49  ;;  %v1234_v58 = vrot.slane %v1218_v52, %v3093_v46  ;;  %v1226_v63 = vcombine.high %v1218_v52, %v1218_v52 }
  0xdb   : > { %v2781_v59 = vpop.f32.mrf.mxu0  ;;  %v2809_v60 = vpop.f32.mrf.mxu1  ;;  %v3120_v0 = vrot.slane %v1211_v51, %v3093_v46 }
  0xdc   : > { %639 = vst.msk [vmem:[%s3108_s9] sm:$0xff] %vm341_vm1, %v436_v55  ;;  %648 = vst.msk [vmem:[%s3098_s30 + $0x8] sm:$0xff] %vm341_vm1, %v3110_v56  ;;  %v3129_v1 = vrot.slane %v3110_v56, %v3093_v46  ;;  %v657_v2 = vrot.slane %v436_v55, %v3100_v50  ;;  %v668_v11 = vrot.slane %v436_v55, %v3112_v57 }
  0xdd   : > { %v440_v5 = vpop.f32.mrf.mxu0  ;;  %v615_v6 = vpop.f32.mrf.mxu1  ;;  %v3148_v16 = vrot.slane %v1234_v58, %v3100_v50  ;;  %v1248_v17 = vrot.slane %v1226_v63, %v3093_v46  ;;  %v1256_v18 = vcombine.high %v1234_v58, %v1234_v58  ;;  %v679_v20 = vrot.slane %v436_v55, %v3115_v61 }
  0xde   : > { %v3142_v10 = vadd.f32 %v440_v5, %v314_v34  ;;  %663 = vbcast.lane.b32.xlu1 %v657_v2, 264  ;;  %659 = vbcast.lane.b32.xlu0 %v657_v2, 256  ;;  %v3145_v15 = vadd.f32 %v615_v6, %v496_v12  ;;  %v690_v21 = vrot.slane %v436_v55, %v3117_v62  ;;  %v511_v12 = vpop.permute.xlu0 %510 }
  0xdf   : > { %v2784_v13 = vpop.f32.mrf.mxu0  ;;  %v2812_v14 = vpop.f32.mrf.mxu1  ;;  %v3157_v22 = vrot.slane %v436_v55, %v3132_v3  ;;  %v3160_v23 = vrot.slane %v436_v55, %v3134_v4  ;;  %v3163_v26 = vrot.slane %v436_v55, %v3136_v7  ;;  %v3166_v27 = vrot.slane %v436_v55, %v3138_v8 }
  0xe0   : > { %640 = vst.msk [vmem:[%s3108_s9 + $0x8] sm:$0xff] %vm341_vm1, %v3142_v10  ;;  %v3170_v28 = vrot.slane %v3142_v10, %v3100_v50  ;;  %649 = vst.msk [vmem:[%s3098_s30 + $0x10] sm:$0xff] %vm341_vm1, %v3145_v15  ;;  %v3177_v29 = vrot.slane %v3145_v15, %v3093_v46  ;;  %v3186_v32 = vrot.slane %v3142_v10, %v3112_v57 }
  0xe1   : > { %v445_v24 = vpop.f32.mrf.mxu0  ;;  %v620_v25 = vpop.f32.mrf.mxu1  ;;  %v3190_v38 = vrot.slane %v3142_v10, %v3115_v61  ;;  %v3193_v39 = vrot.slane %v1248_v17, %v3100_v50  ;;  %v3196_v42 = vrot.slane %v1256_v18, %v3100_v50  ;;  %v1258_v43 = vcombine.high %v1248_v17, %v1248_v17 }
  0xe2   : > { %v3179_v30 = vadd.f32 %v620_v25, %v501_v19  ;;  %674 = vbcast.lane.b32.xlu1 %v668_v11, 264  ;;  %670 = vbcast.lane.b32.xlu0 %v668_v11, 256  ;;  %v3182_v31 = vadd.f32 %v445_v24, %v3082_v33  ;;  %v3212_v45 = vrot.slane %v3142_v10, %v3117_v62 }
  0xe3   : > { %v2787_v34 = vpop.f32.mrf.mxu0  ;;  %v2815_v37 = vpop.f32.mrf.mxu1  ;;  %v3244_v6 = vrot.slane %v1258_v43, %v3100_v50  ;;  %v1241_v11 = vrot.slane %v3120_v0, %v3093_v46 }
  0xe4   : > { %650 = vst.msk [vmem:[%s3098_s30 + $0x18] sm:$0xff] %vm341_vm1, %v3179_v30  ;;  %v3205_v44 = vrot.slane %v3179_v30, %v3093_v46  ;;  %641 = vst.msk [vmem:[%s3108_s9 + $0x10] sm:$0xff] %vm341_vm1, %v3182_v31  ;;  %v3218_v52 = vrot.slane %v3182_v31, %v3115_v61  ;;  %v3222_v53 = vrot.slane %v3182_v31, %v3117_v62 }
  0xe5   : > { %v450_v49 = vpop.f32.mrf.mxu0  ;;  %v625_v51 = vpop.f32.mrf.mxu1  ;;  %v3226_v54 = vrot.slane %v3182_v31, %v3132_v3  ;;  %v3230_v55 = vrot.slane %v3182_v31, %v3134_v4  ;;  %v3237_v60 = vrot.slane %v3182_v31, %v3136_v7  ;;  %v3241_v5 = vrot.slane %v3182_v31, %v3138_v8 }
  0xe6   : > { %685 = vbcast.lane.b32.xlu1 %v679_v20, 264  ;;  %681 = vbcast.lane.b32.xlu0 %v679_v20, 256  ;;  %v451_v58 = vadd.f32 %v450_v49, %v3084_v35  ;;  %v3233_v59 = vadd.f32 %v625_v51, %v506_v48  ;;  %v1227_v35 = vcombine.high %v3120_v0, %v3120_v0  ;;  %v516_v48 = vpop.permute.xlu1 %515 }
  0xe7   : > { %v2790_v63 = vpop.f32.mrf.mxu0  ;;  %v2818_v2 = vpop.f32.mrf.mxu1  ;;  %v3289_v13 = vrot.slane %v1241_v11, %v3100_v50  ;;  %v1257_v47 = vcombine.high %v1241_v11, %v1241_v11 }
  0xe8   : > { %642 = vst.msk [vmem:[%s3108_s9 + $0x18] sm:$0xff] %vm341_vm1, %v451_v58  ;;  %651 = vst.msk [vmem:[%s3098_s30 + $0x20] sm:$0xff] %vm341_vm1, %v3233_v59  ;;  %v3259_v14 = vrot.slane %v3233_v59, %v3093_v46  ;;  %v3262_v17 = vrot.slane %v451_v58, %v3100_v50  ;;  %v3265_v18 = vrot.slane %v451_v58, %v3112_v57 }
  0xe9   : > { %v455_v0 = vpop.f32.mrf.mxu0  ;;  %v630_v19 = vpop.f32.mrf.mxu1  ;;  %v3268_v20 = vrot.slane %v451_v58, %v3115_v61  ;;  %v3271_v24 = vrot.slane %v451_v58, %v3117_v62  ;;  %v3274_v25 = vrot.slane %v451_v58, %v3132_v3  ;;  %v3277_v34 = vrot.slane %v451_v58, %v3134_v4  ;;  %4182 = vst [vmem:[#allocation5_spill] sm:$0xff] %v3289_v13 }
  0xea   : > { %v456_v37 = vadd.f32 %v455_v0, %v3086_v36  ;;  %v3280_v43 = vadd.f32 %v630_v19, %v511_v12  ;;  %696 = vbcast.lane.b32.xlu1 %v690_v21, 264  ;;  %692 = vbcast.lane.b32.xlu0 %v690_v21, 256  ;;  %v3283_v49 = vrot.slane %v451_v58, %v3136_v7 }
  0xeb   : > { %v2793_v51 = vpop.f32.mrf.mxu0  ;;  %v2821_v63 = vpop.f32.mrf.mxu1  ;;  %v3286_v2 = vrot.slane %v451_v58, %v3138_v8  ;;  %v1255_v33 = vrot.slane %v1227_v35, %v3093_v46 }
  0xec   : > { %643 = vst.msk [vmem:[%s3108_s9 + $0x20] sm:$0xff] %vm341_vm1, %v456_v37  ;;  %652 = vst.msk [vmem:[%s3098_s30 + $0x28] sm:$0xff] %vm341_vm1, %v3280_v43  ;;  %v3301_v21 = vrot.slane %v3280_v43, %v3093_v46  ;;  %v3304_v58 = vrot.slane %v456_v37, %v3100_v50  ;;  %v3307_v12 = vrot.slane %v456_v37, %v3112_v57 }
  0xed   : > { %v460_v35 = vpop.f32.mrf.mxu0  ;;  %v635_v11 = vpop.f32.mrf.mxu1  ;;  %v3310_v0 = vrot.slane %v1255_v33, %v3100_v50  ;;  %v3313_v19 = vrot.slane %v456_v37, %v3115_v61  ;;  %v3316_v51 = vrot.slane %v1257_v47, %v3100_v50  ;;  %v3319_v63 = vrot.slane %v456_v37, %v3117_v62 }
  0xee   : > { %4183 = vst [vmem:[#allocation6_spill] sm:$0xff] %v3307_v12  ;;  %707 = vbcast.lane.b32.xlu1 %v3157_v22, 264  ;;  %703 = vbcast.lane.b32.xlu0 %v3157_v22, 256  ;;  %v461_v36 = vadd.f32 %v460_v35, %v3088_v40  ;;  %v636_v9 = vadd.f32 %v635_v11, %v516_v48 }
  0xef   : > { %4184 = vst [vmem:[#allocation7_spill] sm:$0xff] %v3310_v0  ;;  %4185 = vst [vmem:[#allocation8_spill] sm:$0xff] %v3313_v19  ;;  %v1259_v0 = vcombine.high %v1255_v33, %v1255_v33  ;;  %v2796_v12 = vpop.f32.mrf.mxu0  ;;  %v3325_v13 = vrot.slane %v456_v37, %v3132_v3  ;;  %v1283_v47 = vrot.slane %v3129_v1, %v3093_v46  ;;  %v2824_v19 = vpop.f32.mrf.mxu1 }
  0xf0   : > { %4186 = vst [vmem:[#allocation9_spill] sm:$0xff] %v3316_v51  ;;  %4187 = vst [vmem:[#allocation10_spill] sm:$0xff] %v3319_v63  ;;  %v3330_v51 = vrot.slane %v456_v37, %v3134_v4  ;;  %v1275_v63 = vcombine.high %v3129_v1, %v3129_v1  ;;  %v3339_v40 = vrot.slane %v636_v9, %v3093_v46 }
  0xf1   : > { %644 = vst.msk [vmem:[%s3108_s9 + $0x28] sm:$0xff] %vm341_vm1, %v461_v36  ;;  %v3342_v22 = vrot.slane %v1259_v0, %v3100_v50  ;;  %v3345_v33 = vrot.slane %v456_v37, %v3136_v7  ;;  %v3348_v48 = vrot.slane %v456_v37, %v3138_v8  ;;  %v465_v12 = vpop.f32.mrf.mxu0  ;;  %v3351_v1 = vrot.slane %v1283_v47, %v3100_v50 }
  0xf2   : > { %653 = vst.msk [vmem:[%s3098_s30 + $0x30] sm:$0x3] %vm645_vm2, %v636_v9  ;;  %v1297_v35 = vrot.slane %v1275_v63, %v3093_v46  ;;  %v1305_v11 = vcombine.high %v1283_v47, %v1283_v47  ;;  %v3355_v9 = vrot.slane %v461_v36, %v3100_v50  ;;  %v466_v0 = vadd.f32 %v465_v12, %v3090_v41 }
  0xf3   : > { %4188 = vst [vmem:[#allocation11_spill] sm:$0xff] %v3345_v33  ;;  %4189 = vst [vmem:[#allocation12_spill] sm:$0xff] %v3348_v48  ;;  %718 = vbcast.lane.b32.xlu1 %v3160_v23, 264  ;;  %714 = vbcast.lane.b32.xlu0 %v3160_v23, 256  ;;  %v4191_v19 = vcombine.high %v3110_v56, %v3110_v56  ;;  %v3373_v41 = vrot.slane %v461_v36, %v3112_v57  ;;  %v2799_v12 = vpop.f32.mrf.mxu0 }
  0xf4   : > { %4190 = vst [vmem:[#allocation13_spill] sm:$0xff] %v3355_v9  ;;  %v3367_v63 = vrot.slane %v1297_v35, %v3100_v50  ;;  %v3370_v47 = vrot.slane %v1305_v11, %v3100_v50  ;;  %v1307_v9 = vcombine.high %v1297_v35, %v1297_v35  ;;  %646 = vst.msk [vmem:[%s3108_s9 + $0x30] sm:$0x3] %vm645_vm2, %v466_v0 }
  0xf5   : > { %v1274_v48 = vrot.slane %v4191_v19, %v3093_v46  ;;  %4192 = vst [vmem:[#allocation14_spill] sm:$0xff] %v3373_v41  ;;  %v3379_v33 = vrot.slane %v461_v36, %v3115_v61  ;;  %v3382_v56 = vrot.slane %v461_v36, %v3117_v62  ;;  %v3388_v35 = vrot.slane %v461_v36, %v3132_v3 }
  0xf6   : > { %v3385_v19 = vrot.slane %v1307_v9, %v3100_v50  ;;  %v1332_v11 = vrot.slane %v3177_v29, %v3093_v46  ;;  %v3393_v12 = vrot.slane %v461_v36, %v3134_v4 }
  0xf7   : > { %v1290_v23 = vrot.slane %v1274_v48, %v3093_v46  ;;  %v1276_v37 = vcombine.high %v1274_v48, %v1274_v48  ;;  %4193 = vst [vmem:[#allocation15_spill] sm:$0xff] %v3379_v33  ;;  %4194 = vst [vmem:[#allocation16_spill] sm:$0xff] %v3382_v56  ;;  %729 = vbcast.lane.b32.xlu1 %v3163_v26, 264  ;;  %725 = vbcast.lane.b32.xlu0 %v3163_v26, 256 }
  0xf8   : > { %4195 = vst [vmem:[#allocation17_spill] sm:$0xff] %v3388_v35  ;;  %4196 = vst [vmem:[#allocation18_spill] sm:$0xff] %v3393_v12  ;;  %v3402_v9 = vrot.slane %v1332_v11, %v3100_v50  ;;  %v1324_v35 = vcombine.high %v3177_v29, %v3177_v29  ;;  %v3407_v56 = vrot.slane %v461_v36, %v3136_v7 }
  0xf9   : > { %v3398_v61 = vrot.slane %v1290_v23, %v3100_v50  ;;  %v1304_v62 = vrot.slane %v1276_v37, %v3093_v46  ;;  %v1306_v48 = vcombine.high %v1290_v23, %v1290_v23  ;;  %v1354_v12 = vcombine.high %v1332_v11, %v1332_v11 }
  0xfa   : > { %4197 = vst [vmem:[#allocation19_spill] sm:$0xff] %v3402_v9  ;;  %4198 = vst [vmem:[#allocation20_spill] sm:$0xff] %v3407_v56  ;;  %v3416_v37 = vrot.slane %v461_v36, %v3138_v8  ;;  %v1346_v23 = vrot.slane %v1324_v35, %v3093_v46  ;;  %v3423_v29 = vrot.slane %v466_v0, %v3100_v50 }
  0xfb   : > { %v3410_v33 = vrot.slane %v1304_v62, %v3100_v50  ;;  %v3413_v26 = vrot.slane %v1306_v48, %v3100_v50  ;;  %v1308_v41 = vcombine.high %v1304_v62, %v1304_v62  ;;  %v3420_v9 = vrot.slane %v1354_v12, %v3100_v50  ;;  %740 = vbcast.lane.b32.xlu1 %v3166_v27, 264 }
  0xfc   : > { %4199 = vst [vmem:[#allocation21_spill] sm:$0xff] %v3416_v37  ;;  %4201 = vst [vmem:[#allocation23_spill] sm:$0xff] %v3423_v29  ;;  %v4202_v11 = vcombine.high %v3145_v15, %v3145_v15  ;;  %736 = vbcast.lane.b32.xlu0 %v3166_v27, 256  ;;  %v3435_v35 = vrot.slane %v466_v0, %v3112_v57  ;;  %v1381_v12 = vrot.slane %v3205_v44, %v3093_v46 }
  0xfd   : > { %4200 = vst [vmem:[#allocation22_spill] sm:$0xff] %v3420_v9  ;;  %v3432_v36 = vrot.slane %v1308_v41, %v3100_v50  ;;  %v3440_v62 = vrot.slane %v1346_v23, %v3100_v50  ;;  %v1356_v48 = vcombine.high %v1346_v23, %v1346_v23  ;;  %v1373_v27 = vcombine.high %v3205_v44, %v3205_v44 }
  0xfe   : > { %v1323_v56 = vrot.slane %v4202_v11, %v3093_v46  ;;  %4203 = vst [vmem:[#allocation24_spill] sm:$0xff] %v3435_v35  ;;  %v3444_v29 = vrot.slane %v1381_v12, %v3100_v50  ;;  %v1403_v41 = vcombine.high %v1381_v12, %v1381_v12  ;;  %v4205_v0 = vcombine.high %v3179_v30, %v3179_v30 }
  0xff   : > { %v3453_v37 = vrot.slane %v1356_v48, %v3100_v50  ;;  %751 = vbcast.lane.b32.xlu1 %v3170_v28, 264  ;;  %v1395_v44 = vrot.slane %v1373_v27, %v3093_v46 }
 0x100   : > { %v1339_v15 = vrot.slane %v1323_v56, %v3093_v46  ;;  %v1325_v11 = vcombine.high %v1323_v56, %v1323_v56  ;;  %4204 = vst [vmem:[#allocation25_spill] sm:$0xff] %v3444_v29  ;;  %v1372_v35 = vrot.slane %v4205_v0, %v3093_v46  ;;  %747 = vbcast.lane.b32.xlu0 %v3170_v28, 256 }
 0x101   : > { %v3463_v12 = vrot.slane %v1403_v41, %v3100_v50 }
 0x102   : > { %v3456_v23 = vrot.slane %v1339_v15, %v3100_v50  ;;  %v1353_v56 = vrot.slane %v1325_v11, %v3093_v46  ;;  %v1355_v9 = vcombine.high %v1339_v15, %v1339_v15  ;;  %v1388_v30 = vrot.slane %v1372_v35, %v3093_v46 }
 0x103   : > { %4207 = vst [vmem:[#allocation27_spill] sm:$0xff] %v3463_v12  ;;  %v1374_v11 = vcombine.high %v1372_v35, %v1372_v35  ;;  %v3473_v15 = vrot.slane %v1395_v44, %v3100_v50  ;;  %762 = vbcast.lane.b32.xlu1 %v3186_v32, 264 }
 0x104   : > { %4206 = vst [vmem:[#allocation26_spill] sm:$0xff] %v3456_v23  ;;  %v3467_v48 = vrot.slane %v1353_v56, %v3100_v50  ;;  %v3470_v0 = vrot.slane %v1355_v9, %v3100_v50  ;;  %v1357_v29 = vcombine.high %v1353_v56, %v1353_v56  ;;  %v1405_v23 = vcombine.high %v1395_v44, %v1395_v44 }
 0x105   : > { %v3476_v28 = vrot.slane %v1388_v30, %v3100_v50  ;;  %v1404_v27 = vcombine.high %v1388_v30, %v1388_v30  ;;  %v1402_v12 = vrot.slane %v1374_v11, %v3093_v46  ;;  %v1422_v9 = vcombine.high %v3259_v14, %v3259_v14  ;;  %758 = vbcast.lane.b32.xlu0 %v3186_v32, 256 }
 0x106   : > { %4208 = vst [vmem:[#allocation28_spill] sm:$0xff] %v3467_v48  ;;  %v3479_v41 = vrot.slane %v1357_v29, %v3100_v50  ;;  %v1430_v48 = vrot.slane %v3259_v14, %v3093_v46  ;;  %v3489_v35 = vrot.slane %v1405_v23, %v3100_v50  ;;  %v4212_v29 = vcombine.high %v3233_v59, %v3233_v59 }
 0x107   : > { %4209 = vst [vmem:[#allocation29_spill] sm:$0xff] %v3476_v28  ;;  %v3492_v56 = vrot.slane %v1404_v27, %v3100_v50  ;;  %v3499_v30 = vrot.slane %v1402_v12, %v3100_v50  ;;  %v1406_v11 = vcombine.high %v1402_v12, %v1402_v12  ;;  %v1444_v32 = vrot.slane %v1422_v9, %v3093_v46 }
 0x108   : > { %4210 = vst [vmem:[#allocation30_spill] sm:$0xff] %v3489_v35  ;;  %v1421_v44 = vrot.slane %v4212_v29, %v3093_v46  ;;  %v3502_v14 = vrot.slane %v1430_v48, %v3100_v50  ;;  %v1452_v28 = vcombine.high %v1430_v48, %v1430_v48  ;;  %v1479_v27 = vrot.slane %v3301_v21, %v3093_v46 }
 0x109   : > { %4211 = vst [vmem:[#allocation31_spill] sm:$0xff] %v3492_v56  ;;  %v3509_v56 = vrot.slane %v1406_v11, %v3100_v50  ;;  %v3512_v59 = vrot.slane %v1444_v32, %v3100_v50  ;;  %v1454_v29 = vcombine.high %v1444_v32, %v1444_v32  ;;  %v1471_v12 = vcombine.high %v3301_v21, %v3301_v21 }
 0x10a   : > { %4213 = vst [vmem:[#allocation32_spill] sm:$0xff] %v3502_v14  ;;  %v1437_v23 = vrot.slane %v1421_v44, %v3093_v46  ;;  %v1423_v35 = vcombine.high %v1421_v44, %v1421_v44  ;;  %773 = vbcast.lane.b32.xlu1 %v3190_v38, 264  ;;  %769 = vbcast.lane.b32.xlu0 %v3190_v38, 256 }
 0x10b   : > { %4214 = vst [vmem:[#allocation33_spill] sm:$0xff] %v3512_v59  ;;  %v3519_v48 = vrot.slane %v1452_v28, %v3100_v50  ;;  %v3526_v11 = vrot.slane %v1454_v29, %v3100_v50  ;;  %v3529_v32 = vrot.slane %v1479_v27, %v3100_v50  ;;  %v1493_v21 = vrot.slane %v1471_v12, %v3093_v46 }
 0x10c   : > { %v3522_v9 = vrot.slane %v1437_v23, %v3100_v50  ;;  %v1451_v44 = vrot.slane %v1423_v35, %v3093_v46  ;;  %v1453_v59 = vcombine.high %v1437_v23, %v1437_v23  ;;  %v1501_v28 = vcombine.high %v1479_v27, %v1479_v27 }
 0x10d   : > { %4215 = vst [vmem:[#allocation34_spill] sm:$0xff] %v3519_v48  ;;  %4217 = vst [vmem:[#allocation36_spill] sm:$0xff] %v3529_v32  ;;  %v3543_v23 = vrot.slane %v1493_v21, %v3100_v50  ;;  %v1503_v29 = vcombine.high %v1493_v21, %v1493_v21  ;;  %v1519_v12 = vrot.slane %v3339_v40, %v3093_v46 }
 0x10e   : > { %4216 = vst [vmem:[#allocation35_spill] sm:$0xff] %v3522_v9  ;;  %v3533_v14 = vrot.slane %v1451_v44, %v3100_v50  ;;  %v1455_v38 = vcombine.high %v1451_v44, %v1451_v44  ;;  %v4218_v9 = vcombine.high %v3280_v43, %v3280_v43  ;;  %v3540_v35 = vrot.slane %v1453_v59, %v3100_v50 }
 0x10f   : > { %4219 = vst [vmem:[#allocation37_spill] sm:$0xff] %v3543_v23  ;;  %784 = vbcast.lane.b32.xlu1 %v3212_v45, 264  ;;  %780 = vbcast.lane.b32.xlu0 %v3212_v45, 256  ;;  %v3553_v43 = vrot.slane %v1501_v28, %v3100_v50  ;;  %v3560_v21 = vrot.slane %v1519_v12, %v3100_v50 }
 0x110   : > { %v1470_v48 = vrot.slane %v4218_v9, %v3093_v46  ;;  %v3550_v27 = vrot.slane %v1455_v38, %v3100_v50  ;;  %v3557_v9 = vrot.slane %v1503_v29, %v3100_v50  ;;  %v4221_v23 = vcombine.high %v3339_v40, %v3339_v40 }
 0x111   : > { %4220 = vst [vmem:[#allocation38_spill] sm:$0xff] %v3553_v43  ;;  %v789_v38 = vrot.slane %v3142_v10, %v3132_v3  ;;  %v800_v3 = vrot.slane %v3142_v10, %v3134_v4  ;;  %v844_v4 = vrot.slane %v3182_v31, %v3112_v57 }
 0x112   : > { %v1486_v59 = vrot.slane %v1470_v48, %v3093_v46  ;;  %v1472_v44 = vcombine.high %v1470_v48, %v1470_v48  ;;  %v1526_v45 = vrot.slane %v4221_v23, %v3093_v46 }
 0x113   : > { %795 = vbcast.lane.b32.xlu1 %v789_v38, 264  ;;  %791 = vbcast.lane.b32.xlu0 %v789_v38, 256 }
 0x114   : > { %v3569_v28 = vrot.slane %v1486_v59, %v3100_v50  ;;  %v1502_v43 = vcombine.high %v1486_v59, %v1486_v59  ;;  %v1500_v32 = vrot.slane %v1472_v44, %v3093_v46  ;;  %v3573_v29 = vrot.slane %v1526_v45, %v3100_v50 }
 0x115   : > { %v811_v46 = vrot.slane %v3142_v10, %v3136_v7 }
 0x116   : > { %v3576_v48 = vrot.slane %v1502_v43, %v3100_v50  ;;  %v3579_v40 = vrot.slane %v1500_v32, %v3100_v50  ;;  %v1504_v23 = vcombine.high %v1500_v32, %v1500_v32  ;;  %v822_v43 = vrot.slane %v3142_v10, %v3138_v8 }
 0x117   : > { %806 = vbcast.lane.b32.xlu1 %v800_v3, 264  ;;  %802 = vbcast.lane.b32.xlu0 %v800_v3, 256  ;;  %v833_v32 = vrot.slane %v3182_v31, %v3100_v50 }
 0x118   : > { %v3584_v12 = vrot.slane %v1504_v23, %v3100_v50 }
 0x11b   : > { %817 = vbcast.lane.b32.xlu1 %v811_v46, 264  ;;  %813 = vbcast.lane.b32.xlu0 %v811_v46, 256 }
 0x11f   : > { %828 = vbcast.lane.b32.xlu1 %v822_v43, 264  ;;  %824 = vbcast.lane.b32.xlu0 %v822_v43, 256 }
 0x123   : > { %839 = vbcast.lane.b32.xlu1 %v833_v32, 264  ;;  %835 = vbcast.lane.b32.xlu0 %v833_v32, 256 }
 0x127   : > { %850 = vbcast.lane.b32.xlu1 %v844_v4, 264  ;;  %846 = vbcast.lane.b32.xlu0 %v844_v4, 256 }
 0x12b   : > { %861 = vbcast.lane.b32.xlu1 %v3218_v52, 264  ;;  %857 = vbcast.lane.b32.xlu0 %v3218_v52, 256 }
 0x12f   : > { %872 = vbcast.lane.b32.xlu1 %v3222_v53, 264  ;;  %868 = vbcast.lane.b32.xlu0 %v3222_v53, 256 }
 0x133   : > { %883 = vbcast.lane.b32.xlu1 %v3226_v54, 264  ;;  %879 = vbcast.lane.b32.xlu0 %v3226_v54, 256 }
 0x137   : > { %894 = vbcast.lane.b32.xlu1 %v3230_v55, 264  ;;  %890 = vbcast.lane.b32.xlu0 %v3230_v55, 256 }
 0x13b   : > { %905 = vbcast.lane.b32.xlu1 %v3237_v60, 264  ;;  %901 = vbcast.lane.b32.xlu0 %v3237_v60, 256 }
 0x13f   : > { %916 = vbcast.lane.b32.xlu1 %v3241_v5, 264  ;;  %912 = vbcast.lane.b32.xlu0 %v3241_v5, 256 }
 0x143   : > { %927 = vbcast.lane.b32.xlu1 %v3262_v17, 264  ;;  %923 = vbcast.lane.b32.xlu0 %v3262_v17, 256 }
 0x147   : > { %938 = vbcast.lane.b32.xlu1 %v3265_v18, 264  ;;  %934 = vbcast.lane.b32.xlu0 %v3265_v18, 256 }
 0x14b   : > { %949 = vbcast.lane.b32.xlu1 %v3268_v20, 264  ;;  %945 = vbcast.lane.b32.xlu0 %v3268_v20, 256 }
 0x14f   : > { %960 = vbcast.lane.b32.xlu1 %v3271_v24, 264  ;;  %956 = vbcast.lane.b32.xlu0 %v3271_v24, 256 }
 0x150   : > { %v664_v50 = vpop.permute.xlu1 %663  ;;  %v660_v57 = vpop.permute.xlu0 %659 }
 0x151   : > { %v1778_v7 = vadd.f32 %v3148_v16, %v664_v50  ;;  %v1777_v8 = vadd.f32 %v3148_v16, %v660_v57 }
 0x153   : > { %971 = vbcast.lane.b32.xlu1 %v3274_v25, 264  ;;  %967 = vbcast.lane.b32.xlu0 %v3274_v25, 256  ;;  %vm1878_vm3 = vcmp.gt.f32.partialorder %v1778_v7, 0.0  ;;  %v1978_v10 = vmul.f32 0.1, %v1778_v7  ;;  %vm1877_vm4 = vcmp.gt.f32.partialorder %v1777_v8, 0.0 }
 0x154   : > { %v1977_v31 = vmul.f32 0.1, %v1777_v8  ;;  %v675_v52 = vpop.permute.xlu1 %674  ;;  %v671_v53 = vpop.permute.xlu0 %670 }
 0x155   : > { %v1780_v54 = vadd.f32 %v3193_v39, %v675_v52  ;;  %v1779_v55 = vadd.f32 %v3193_v39, %v671_v53  ;;  %v2078_v60 = vsel %vm1878_vm3, %v1778_v7, %v1978_v10 }
 0x156   : > { %v2077_v5 = vsel %vm1877_vm4, %v1777_v8, %v1977_v31  ;;  %v2474_v39 = vsel %vm341_vm1, %v2078_v60, 0.0  ;;  %v2276_v32 = vsel %vm341_vm1, %v2078_v60, -inf }
 0x157   : > { %982 = vbcast.lane.b32.xlu1 %v3277_v34, 264  ;;  %978 = vbcast.lane.b32.xlu0 %v3277_v34, 256  ;;  %vm1880_vm5 = vcmp.gt.f32.partialorder %v1780_v54, 0.0  ;;  %v1980_v16 = vmul.f32 0.1, %v1780_v54  ;;  %vm1879_vm6 = vcmp.gt.f32.partialorder %v1779_v55, 0.0 }
 0x158   : > { %v1979_v17 = vmul.f32 0.1, %v1779_v55  ;;  %v686_v18 = vpop.permute.xlu1 %685  ;;  %v682_v20 = vpop.permute.xlu0 %681  ;;  %v2375_v44 = vsel %vm341_vm1, %v2077_v5, 0.0  ;;  %v2177_v7 = vsel %vm341_vm1, %v2077_v5, -inf }
 0x159   : > { %v2080_v24 = vsel %vm1880_vm5, %v1780_v54, %v1980_v16  ;;  %v1782_v34 = vadd.f32 %v3196_v42, %v686_v18  ;;  %v1781_v59 = vadd.f32 %v3196_v42, %v682_v20  ;;  %v4222_v18 = vld [vmem:[#allocation5_spill] sm:$0xff] }
 0x15a   : > { %v2079_v25 = vsel %vm1879_vm6, %v1779_v55, %v1979_v17  ;;  %v2475_v45 = vsel %vm341_vm1, %v2080_v24, 0.0 }
 0x15b   : > { %993 = vbcast.lane.b32.xlu1 %v3283_v49, 264  ;;  %989 = vbcast.lane.b32.xlu0 %v3283_v49, 256  ;;  %v2376_v49 = vsel %vm341_vm1, %v2079_v25, 0.0  ;;  %v2476_v38 = vadd.f32 %v2475_v45, %v2474_v39  ;;  %vm1882_vm7 = vcmp.gt.f32.partialorder %v1782_v34, 0.0  ;;  %v1982_v3 = vmul.f32 0.1, %v1782_v34 }
 0x15c   : > { %v2377_v23 = vadd.f32 %v2376_v49, %v2375_v44  ;;  %vm1881_vm8 = vcmp.gt.f32.partialorder %v1781_v59, 0.0  ;;  %v1981_v46 = vmul.f32 0.1, %v1781_v59  ;;  %v697_v43 = vpop.permute.xlu1 %696  ;;  %v693_v42 = vpop.permute.xlu0 %692  ;;  %v4223_v44 = vld [vmem:[#allocation6_spill] sm:$0xff] }
 0x15d   : > { %v2082_v4 = vsel %vm1882_vm7, %v1782_v34, %v1982_v3  ;;  %v1784_v50 = vadd.f32 %v3244_v6, %v697_v43  ;;  %v1783_v57 = vadd.f32 %v3244_v6, %v693_v42 }
 0x15e   : > { %v2278_v8 = vsel %vm341_vm1, %v2082_v4, -inf  ;;  %v2081_v10 = vsel %vm1881_vm8, %v1781_v59, %v1981_v46  ;;  %v2178_v59 = vsel %vm341_vm1, %v2079_v25, -inf }
 0x15f   : > { %1004 = vbcast.lane.b32.xlu1 %v3286_v2, 264  ;;  %1000 = vbcast.lane.b32.xlu0 %v3286_v2, 256  ;;  %v2477_v2 = vsel %vm341_vm1, %v2082_v4, 0.0  ;;  %v2279_v31 = vmax.f32 %v2276_v32, %v2278_v8  ;;  %v2179_v53 = vsel %vm341_vm1, %v2081_v10, -inf  ;;  %v2378_v54 = vsel %vm341_vm1, %v2081_v10, 0.0  ;;  %v4225_v10 = vld [vmem:[#allocation8_spill] sm:$0xff] }
 0x160   : > { %v2478_v52 = vadd.f32 %v2477_v2, %v2476_v38  ;;  %v2180_v55 = vmax.f32 %v2177_v7, %v2179_v53  ;;  %v2379_v60 = vadd.f32 %v2378_v54, %v2377_v23  ;;  %vm1884_vm9 = vcmp.gt.f32.partialorder %v1784_v50, 0.0  ;;  %v708_v5 = vpop.permute.xlu1 %707  ;;  %v704_v16 = vpop.permute.xlu0 %703  ;;  %v4224_v7 = vld [vmem:[#allocation7_spill] sm:$0xff] }
 0x161   : > { %v1984_v6 = vmul.f32 0.1, %v1784_v50  ;;  %vm1883_vm10 = vcmp.gt.f32.partialorder %v1783_v57, 0.0  ;;  %v1983_v17 = vmul.f32 0.1, %v1783_v57  ;;  %v1786_v20 = vadd.f32 %v4222_v18, %v708_v5 }
 0x162   : > { %v1785_v34 = vadd.f32 %v4222_v18, %v704_v16 }
 0x163   : > { %1015 = vbcast.lane.b32.xlu1 %v3304_v58, 264  ;;  %1011 = vbcast.lane.b32.xlu0 %v3304_v58, 256  ;;  %v2277_v58 = vsel %vm341_vm1, %v2080_v24, -inf  ;;  %v2084_v39 = vsel %vm1884_vm9, %v1784_v50, %v1984_v6  ;;  %v2083_v38 = vsel %vm1883_vm10, %v1783_v57, %v1983_v17  ;;  %vm1886_vm11 = vcmp.gt.f32.partialorder %v1786_v20, 0.0 }
 0x164   : > { %v2280_v45 = vsel %vm341_vm1, %v2084_v39, -inf  ;;  %v2479_v49 = vsel %vm341_vm1, %v2084_v39, 0.0  ;;  %v2181_v46 = vsel %vm341_vm1, %v2083_v38, -inf  ;;  %v2380_v43 = vsel %vm341_vm1, %v2083_v38, 0.0 }
 0x165   : > { %v2281_v23 = vmax.f32 %v2277_v58, %v2280_v45  ;;  %v2480_v3 = vadd.f32 %v2479_v49, %v2478_v52  ;;  %v719_v24 = vpop.permute.xlu1 %718  ;;  %v715_v42 = vpop.permute.xlu0 %714  ;;  %v2182_v25 = vmax.f32 %v2178_v59, %v2181_v46  ;;  %v2381_v32 = vadd.f32 %v2380_v43, %v2379_v60 }
 0x166   : > { %v1986_v4 = vmul.f32 0.1, %v1786_v20  ;;  %vm1885_vm12 = vcmp.gt.f32.partialorder %v1785_v34, 0.0  ;;  %v1985_v50 = vmul.f32 0.1, %v1785_v34  ;;  %v1788_v8 = vadd.f32 %v4224_v7, %v719_v24 }
 0x167   : > { %1026 = vbcast.lane.b32.xlu1 %v4223_v44, 264  ;;  %1022 = vbcast.lane.b32.xlu0 %v4223_v44, 256  ;;  %v1787_v2 = vadd.f32 %v4224_v7, %v715_v42  ;;  %v4227_v44 = vld [vmem:[#allocation9_spill] sm:$0xff] }
 0x168   : > { %v2086_v57 = vsel %vm1886_vm11, %v1786_v20, %v1986_v4  ;;  %v2085_v54 = vsel %vm1885_vm12, %v1785_v34, %v1985_v50  ;;  %vm1888_vm13 = vcmp.gt.f32.partialorder %v1788_v8, 0.0  ;;  %v1988_v39 = vmul.f32 0.1, %v1788_v8  ;;  %v4226_v20 = vld [vmem:[#allocation10_spill] sm:$0xff] }
 0x169   : > { %v2282_v52 = vsel %vm341_vm1, %v2086_v57, -inf  ;;  %v2481_v53 = vsel %vm341_vm1, %v2086_v57, 0.0  ;;  %v730_v60 = vpop.permute.xlu1 %729  ;;  %v726_v6 = vpop.permute.xlu0 %725  ;;  %v2183_v17 = vsel %vm341_vm1, %v2085_v54, -inf  ;;  %v2382_v18 = vsel %vm341_vm1, %v2085_v54, 0.0 }
 0x16a   : > { %v3659_v5 = vmax.f32 %v2279_v31, %v2282_v52  ;;  %v2482_v16 = vadd.f32 %v2481_v53, %v2480_v3  ;;  %v3663_v58 = vmax.f32 %v2180_v55, %v2183_v17  ;;  %v2383_v59 = vadd.f32 %v2382_v18, %v2381_v32 }
 0x16b   : > { %1037 = vbcast.lane.b32.xlu1 %v4225_v10, 264  ;;  %1033 = vbcast.lane.b32.xlu0 %v4225_v10, 256  ;;  %vm1887_vm14 = vcmp.gt.f32.partialorder %v1787_v2, 0.0  ;;  %v1987_v34 = vmul.f32 0.1, %v1787_v2  ;;  %v1790_v45 = vadd.f32 %v4227_v44, %v730_v60  ;;  %v1789_v31 = vadd.f32 %v4227_v44, %v726_v6 }
 0x16c   : > { %v2088_v49 = vsel %vm1888_vm13, %v1788_v8, %v1988_v39 }
 0x16d   : > { %v741_v38 = vpop.permute.xlu1 %740  ;;  %v2284_v46 = vsel %vm341_vm1, %v2088_v49, -inf  ;;  %v2483_v55 = vsel %vm341_vm1, %v2088_v49, 0.0  ;;  %v2087_v43 = vsel %vm1887_vm14, %v1787_v2, %v1987_v34  ;;  %vm1890_vm15 = vcmp.gt.f32.partialorder %v1790_v45, 0.0 }
 0x16e   : > { %v737_v3 = vpop.permute.xlu0 %736  ;;  %v3672_v24 = vmax.f32 %v2281_v23, %v2284_v46  ;;  %v2484_v42 = vadd.f32 %v2483_v55, %v2482_v16  ;;  %v2185_v32 = vsel %vm341_vm1, %v2087_v43, -inf  ;;  %v2384_v4 = vsel %vm341_vm1, %v2087_v43, 0.0 }
 0x16f   : > { %1048 = vbcast.lane.b32.xlu1 %v4226_v20, 264  ;;  %1044 = vbcast.lane.b32.xlu0 %v4226_v20, 256  ;;  %v3678_v50 = vmax.f32 %v2182_v25, %v2185_v32  ;;  %v2385_v7 = vadd.f32 %v2384_v4, %v2383_v59  ;;  %v1990_v8 = vmul.f32 0.1, %v1790_v45  ;;  %vm1889_vm0 = vcmp.gt.f32.partialorder %v1789_v31, 0.0 }
 0x170   : > { %v1989_v10 = vmul.f32 0.1, %v1789_v31  ;;  %v1792_v2 = vadd.f32 %v3342_v22, %v741_v38  ;;  %v1791_v23 = vadd.f32 %v3342_v22, %v737_v3  ;;  %v4228_v38 = vld [vmem:[#allocation11_spill] sm:$0xff] }
 0x171   : > { %v752_v57 = vpop.permute.xlu1 %751  ;;  %v2090_v53 = vsel %vm1890_vm15, %v1790_v45, %v1990_v8 }
 0x172   : > { %v748_v52 = vpop.permute.xlu0 %747  ;;  %v1794_v54 = vadd.f32 %v3351_v1, %v752_v57  ;;  %v2485_v25 = vsel %vm341_vm1, %v2090_v53, 0.0  ;;  %v2089_v6 = vsel %vm1889_vm0, %v1789_v31, %v1989_v10  ;;  %vm1892_vm2 = vcmp.gt.f32.partialorder %v1792_v2, 0.0 }
 0x173   : > { %1059 = vbcast.lane.b32.xlu1 %v3325_v13, 264  ;;  %1055 = vbcast.lane.b32.xlu0 %v3325_v13, 256  ;;  %v1793_v60 = vadd.f32 %v3351_v1, %v748_v52  ;;  %v2286_v13 = vsel %vm341_vm1, %v2090_v53, -inf  ;;  %v2486_v16 = vadd.f32 %v2485_v25, %v2484_v42  ;;  %v2187_v17 = vsel %vm341_vm1, %v2089_v6, -inf }
 0x174   : > { %v2287_v22 = vmax.f32 %v3659_v5, %v2286_v13  ;;  %v2386_v18 = vsel %vm341_vm1, %v2089_v6, 0.0  ;;  %v2188_v59 = vmax.f32 %v3663_v58, %v2187_v17  ;;  %v1992_v39 = vmul.f32 0.1, %v1792_v2 }
 0x175   : > { %v2387_v1 = vadd.f32 %v2386_v18, %v2385_v7  ;;  %vm1891_vm3 = vcmp.gt.f32.partialorder %v1791_v23, 0.0  ;;  %v763_v20 = vpop.permute.xlu1 %762  ;;  %v1991_v44 = vmul.f32 0.1, %v1791_v23  ;;  %vm1894_vm4 = vcmp.gt.f32.partialorder %v1794_v54, 0.0 }
 0x176   : > { %v1994_v45 = vmul.f32 0.1, %v1794_v54  ;;  %vm1893_vm5 = vcmp.gt.f32.partialorder %v1793_v60, 0.0  ;;  %v1993_v31 = vmul.f32 0.1, %v1793_v60  ;;  %v1796_v5 = vadd.f32 %v3367_v63, %v763_v20 }
 0x177   : > { %1070 = vbcast.lane.b32.xlu1 %v3330_v51, 264  ;;  %1066 = vbcast.lane.b32.xlu0 %v3330_v51, 256  ;;  %v759_v34 = vpop.permute.xlu0 %758  ;;  %v2092_v51 = vsel %vm1892_vm2, %v1792_v2, %v1992_v39  ;;  %v2091_v46 = vsel %vm1891_vm3, %v1791_v23, %v1991_v44 }
 0x178   : > { %v1795_v49 = vadd.f32 %v3367_v63, %v759_v34  ;;  %v2288_v58 = vsel %vm341_vm1, %v2092_v51, -inf  ;;  %v2487_v3 = vsel %vm341_vm1, %v2092_v51, 0.0  ;;  %v2094_v55 = vsel %vm1894_vm4, %v1794_v54, %v1994_v45 }
 0x179   : > { %v2289_v43 = vmax.f32 %v3672_v24, %v2288_v58  ;;  %v2488_v42 = vadd.f32 %v2487_v3, %v2486_v16  ;;  %v2189_v32 = vsel %vm341_vm1, %v2091_v46, -inf  ;;  %v2388_v4 = vsel %vm341_vm1, %v2091_v46, 0.0  ;;  %v4229_v24 = vld [vmem:[#allocation12_spill] sm:$0xff] }
 0x17a   : > { %v2190_v63 = vmax.f32 %v3678_v50, %v2189_v32  ;;  %v2389_v10 = vadd.f32 %v2388_v4, %v2387_v1  ;;  %v2290_v2 = vsel %vm341_vm1, %v2094_v55, -inf  ;;  %v2489_v57 = vsel %vm341_vm1, %v2094_v55, 0.0 }
 0x17b   : > { %1081 = vbcast.lane.b32.xlu1 %v4228_v38, 264  ;;  %1077 = vbcast.lane.b32.xlu0 %v4228_v38, 256  ;;  %v3706_v52 = vmax.f32 %v2287_v22, %v2290_v2  ;;  %v2490_v23 = vadd.f32 %v2489_v57, %v2488_v42  ;;  %v2093_v53 = vsel %vm1893_vm5, %v1793_v60, %v1993_v31  ;;  %vm1896_vm6 = vcmp.gt.f32.partialorder %v1796_v5, 0.0 }
 0x17c   : > { %v774_v7 = vpop.permute.xlu1 %773  ;;  %v770_v8 = vpop.permute.xlu0 %769  ;;  %v2191_v54 = vsel %vm341_vm1, %v2093_v53, -inf  ;;  %v2390_v13 = vsel %vm341_vm1, %v2093_v53, 0.0  ;;  %v1996_v50 = vmul.f32 0.1, %v1796_v5  ;;  %vm1895_vm7 = vcmp.gt.f32.partialorder %v1795_v49, 0.0 }
 0x17d   : > { %v3713_v25 = vmax.f32 %v2188_v59, %v2191_v54  ;;  %v2391_v6 = vadd.f32 %v2390_v13, %v2389_v10  ;;  %v1995_v16 = vmul.f32 0.1, %v1795_v49  ;;  %v1798_v22 = vadd.f32 %v3370_v47, %v774_v7  ;;  %v4230_v59 = vld [vmem:[#allocation13_spill] sm:$0xff]  ;;  %v4231_v7 = vld [vmem:[#allocation14_spill] sm:$0xff] }
 0x17e   : > { %v2096_v60 = vsel %vm1896_vm6, %v1796_v5, %v1996_v50  ;;  %v1797_v1 = vadd.f32 %v3370_v47, %v770_v8 }
 0x17f   : > { %1092 = vbcast.lane.b32.xlu1 %v4229_v24, 264  ;;  %1088 = vbcast.lane.b32.xlu0 %v4229_v24, 256  ;;  %v2292_v34 = vsel %vm341_vm1, %v2096_v60, -inf  ;;  %v2491_v44 = vsel %vm341_vm1, %v2096_v60, 0.0  ;;  %v2095_v45 = vsel %vm1895_vm7, %v1795_v49, %v1995_v16  ;;  %vm1898_vm8 = vcmp.gt.f32.partialorder %v1798_v22, 0.0 }
 0x180   : > { %v3723_v51 = vmax.f32 %v2289_v43, %v2292_v34  ;;  %v2492_v31 = vadd.f32 %v2491_v44, %v2490_v23  ;;  %v2193_v5 = vsel %vm341_vm1, %v2095_v45, -inf  ;;  %v2392_v47 = vsel %vm341_vm1, %v2095_v45, 0.0 }
 0x181   : > { %v785_v17 = vpop.permute.xlu1 %784  ;;  %v781_v18 = vpop.permute.xlu0 %780  ;;  %v3727_v38 = vmax.f32 %v2190_v63, %v2193_v5  ;;  %v1998_v58 = vmul.f32 0.1, %v1798_v22  ;;  %vm1897_vm9 = vcmp.gt.f32.partialorder %v1797_v1, 0.0  ;;  %v1997_v49 = vmul.f32 0.1, %v1797_v1 }
 0x182   : > { %v1800_v39 = vadd.f32 %v3385_v19, %v785_v17  ;;  %v1799_v20 = vadd.f32 %v3385_v19, %v781_v18  ;;  %v2393_v19 = vadd.f32 %v2392_v47, %v2391_v6 }
 0x183   : > { %1103 = vbcast.lane.b32.xlu1 %v4230_v59, 264  ;;  %1099 = vbcast.lane.b32.xlu0 %v4230_v59, 256  ;;  %v2098_v42 = vsel %vm1898_vm8, %v1798_v22, %v1998_v58  ;;  %v2097_v10 = vsel %vm1897_vm9, %v1797_v1, %v1997_v49 }
 0x184   : > { %vm1900_vm10 = vcmp.gt.f32.partialorder %v1800_v39, 0.0  ;;  %v2000_v55 = vmul.f32 0.1, %v1800_v39  ;;  %vm1899_vm11 = vcmp.gt.f32.partialorder %v1799_v20, 0.0  ;;  %v1999_v43 = vmul.f32 0.1, %v1799_v20 }
 0x185   : > { %v796_v3 = vpop.permute.xlu1 %795  ;;  %v792_v46 = vpop.permute.xlu0 %791  ;;  %v2294_v8 = vsel %vm341_vm1, %v2098_v42, -inf  ;;  %v2493_v63 = vsel %vm341_vm1, %v2098_v42, 0.0  ;;  %v2195_v53 = vsel %vm341_vm1, %v2097_v10, -inf  ;;  %v2394_v24 = vsel %vm341_vm1, %v2097_v10, 0.0 }
 0x186   : > { %v1802_v32 = vadd.f32 %v3398_v61, %v796_v3  ;;  %v1801_v4 = vadd.f32 %v3398_v61, %v792_v46  ;;  %v2100_v2 = vsel %vm1900_vm10, %v1800_v39, %v2000_v55  ;;  %v2295_v57 = vmax.f32 %v3706_v52, %v2294_v8  ;;  %v4232_v52 = vld [vmem:[#allocation15_spill] sm:$0xff] }
 0x187   : > { %1114 = vbcast.lane.b32.xlu1 %v4231_v7, 264  ;;  %1110 = vbcast.lane.b32.xlu0 %v4231_v7, 256  ;;  %v2494_v23 = vadd.f32 %v2493_v63, %v2492_v31  ;;  %v2196_v61 = vmax.f32 %v3713_v25, %v2195_v53  ;;  %v2395_v50 = vadd.f32 %v2394_v24, %v2393_v19  ;;  %v2296_v6 = vsel %vm341_vm1, %v2100_v2, -inf }
 0x188   : > { %v2495_v16 = vsel %vm341_vm1, %v2100_v2, 0.0  ;;  %v2297_v22 = vmax.f32 %v3723_v51, %v2296_v6  ;;  %v2099_v18 = vsel %vm1899_vm11, %v1799_v20, %v1999_v43  ;;  %vm1902_vm12 = vcmp.gt.f32.partialorder %v1802_v32, 0.0 }
 0x189   : > { %v807_v54 = vpop.permute.xlu1 %806  ;;  %v803_v13 = vpop.permute.xlu0 %802  ;;  %v2496_v17 = vadd.f32 %v2495_v16, %v2494_v23  ;;  %v2197_v60 = vsel %vm341_vm1, %v2099_v18, -inf  ;;  %v2396_v1 = vsel %vm341_vm1, %v2099_v18, 0.0  ;;  %v2002_v25 = vmul.f32 0.1, %v1802_v32  ;;  %v4234_v23 = vld [vmem:[#allocation17_spill] sm:$0xff] }
 0x18a   : > { %vm1901_vm13 = vcmp.gt.f32.partialorder %v1801_v4, 0.0  ;;  %v2198_v39 = vmax.f32 %v3727_v38, %v2197_v60  ;;  %v2397_v34 = vadd.f32 %v2396_v1, %v2395_v50  ;;  %v2001_v44 = vmul.f32 0.1, %v1801_v4  ;;  %v4233_v38 = vld [vmem:[#allocation16_spill] sm:$0xff] }
 0x18b   : > { %1125 = vbcast.lane.b32.xlu1 %v4232_v52, 264  ;;  %1121 = vbcast.lane.b32.xlu0 %v4232_v52, 256  ;;  %v1804_v45 = vadd.f32 %v3410_v33, %v807_v54  ;;  %v2102_v20 = vsel %vm1902_vm12, %v1802_v32, %v2002_v25  ;;  %v1803_v31 = vadd.f32 %v3410_v33, %v803_v13 }
 0x18c   : > { %v2298_v19 = vsel %vm341_vm1, %v2102_v20, -inf  ;;  %v2497_v58 = vsel %vm341_vm1, %v2102_v20, 0.0  ;;  %v2101_v3 = vsel %vm1901_vm13, %v1801_v4, %v2001_v44  ;;  %v4235_v44 = vld [vmem:[#allocation18_spill] sm:$0xff] }
 0x18d   : > { %v818_v59 = vpop.permute.xlu1 %817  ;;  %v814_v51 = vpop.permute.xlu0 %813  ;;  %vm1904_vm14 = vcmp.gt.f32.partialorder %v1804_v45, 0.0  ;;  %v3757_v46 = vmax.f32 %v2295_v57, %v2298_v19  ;;  %v2498_v49 = vadd.f32 %v2497_v58, %v2496_v17  ;;  %v2199_v55 = vsel %vm341_vm1, %v2101_v3, -inf }
 0x18e   : > { %v1806_v5 = vadd.f32 %v3413_v26, %v818_v59  ;;  %v1805_v47 = vadd.f32 %v3413_v26, %v814_v51  ;;  %v2398_v33 = vsel %vm341_vm1, %v2101_v3, 0.0  ;;  %v3761_v42 = vmax.f32 %v2196_v61, %v2199_v55 }
 0x18f   : > { %1136 = vbcast.lane.b32.xlu1 %v4233_v38, 264  ;;  %1132 = vbcast.lane.b32.xlu0 %v4233_v38, 256  ;;  %v2399_v26 = vadd.f32 %v2398_v33, %v2397_v34  ;;  %v2004_v43 = vmul.f32 0.1, %v1804_v45  ;;  %vm1903_vm15 = vcmp.gt.f32.partialorder %v1803_v31, 0.0 }
 0x190   : > { %v2003_v4 = vmul.f32 0.1, %v1803_v31  ;;  %vm1906_vm0 = vcmp.gt.f32.partialorder %v1806_v5, 0.0  ;;  %v2006_v8 = vmul.f32 0.1, %v1806_v5  ;;  %vm1905_vm2 = vcmp.gt.f32.partialorder %v1805_v47, 0.0 }
 0x191   : > { %v829_v32 = vpop.permute.xlu1 %828  ;;  %v825_v7 = vpop.permute.xlu0 %824  ;;  %v2104_v63 = vsel %vm1904_vm14, %v1804_v45, %v2004_v43  ;;  %v2005_v10 = vmul.f32 0.1, %v1805_v47 }
 0x192   : > { %v1808_v2 = vadd.f32 %v3432_v36, %v829_v32  ;;  %v1807_v57 = vadd.f32 %v3432_v36, %v825_v7  ;;  %v2300_v53 = vsel %vm341_vm1, %v2104_v63, -inf  ;;  %v2499_v24 = vsel %vm341_vm1, %v2104_v63, 0.0 }
 0x193   : > { %1147 = vbcast.lane.b32.xlu1 %v4234_v23, 264  ;;  %1143 = vbcast.lane.b32.xlu0 %v4234_v23, 256  ;;  %v2103_v54 = vsel %vm1903_vm15, %v1803_v31, %v2003_v4  ;;  %v2106_v13 = vsel %vm1906_vm0, %v1806_v5, %v2006_v8  ;;  %v3770_v61 = vmax.f32 %v2297_v22, %v2300_v53  ;;  %v4236_v5 = vld [vmem:[#allocation19_spill] sm:$0xff] }
 0x194   : > { %v2500_v50 = vadd.f32 %v2499_v24, %v2498_v49  ;;  %v2201_v6 = vsel %vm341_vm1, %v2103_v54, -inf  ;;  %v2400_v16 = vsel %vm341_vm1, %v2103_v54, 0.0  ;;  %v2302_v60 = vsel %vm341_vm1, %v2106_v13, -inf  ;;  %v4238_v54 = vld [vmem:[#allocation22_spill] sm:$0xff] }
 0x195   : > { %v840_v17 = vpop.permute.xlu1 %839  ;;  %v836_v18 = vpop.permute.xlu0 %835  ;;  %v3774_v36 = vmax.f32 %v2198_v39, %v2201_v6  ;;  %v2401_v52 = vadd.f32 %v2400_v16, %v2399_v26  ;;  %v2501_v1 = vsel %vm341_vm1, %v2106_v13, 0.0  ;;  %v2303_v25 = vmax.f32 %v3757_v46, %v2302_v60 }
 0x196   : > { %v2502_v34 = vadd.f32 %v2501_v1, %v2500_v50  ;;  %v2105_v22 = vsel %vm1905_vm2, %v1805_v47, %v2005_v10  ;;  %vm1908_vm3 = vcmp.gt.f32.partialorder %v1808_v2, 0.0  ;;  %v2008_v59 = vmul.f32 0.1, %v1808_v2  ;;  %v4239_v50 = vld [vmem:[#allocation21_spill] sm:$0xff] }
 0x197   : > { %1158 = vbcast.lane.b32.xlu1 %v4235_v44, 264  ;;  %1154 = vbcast.lane.b32.xlu0 %v4235_v44, 256  ;;  %v2203_v45 = vsel %vm341_vm1, %v2105_v22, -inf  ;;  %v2402_v39 = vsel %vm341_vm1, %v2105_v22, 0.0  ;;  %vm1907_vm4 = vcmp.gt.f32.partialorder %v1807_v57, 0.0  ;;  %v1810_v19 = vadd.f32 %v4236_v5, %v840_v17 }
 0x198   : > { %v2204_v51 = vmax.f32 %v3761_v42, %v2203_v45  ;;  %v2403_v20 = vadd.f32 %v2402_v39, %v2401_v52  ;;  %v2007_v31 = vmul.f32 0.1, %v1807_v57  ;;  %v2108_v47 = vsel %vm1908_vm3, %v1808_v2, %v2008_v59  ;;  %v4237_v42 = vld [vmem:[#allocation20_spill] sm:$0xff] }
 0x199   : > { %v851_v58 = vpop.permute.xlu1 %850  ;;  %v847_v3 = vpop.permute.xlu0 %846  ;;  %v1809_v38 = vadd.f32 %v4236_v5, %v836_v18  ;;  %v2304_v55 = vsel %vm341_vm1, %v2108_v47, -inf  ;;  %v2503_v33 = vsel %vm341_vm1, %v2108_v47, 0.0  ;;  %vm1910_vm5 = vcmp.gt.f32.partialorder %v1810_v19, 0.0  ;;  %v4240_v5 = vld [vmem:[#allocation23_spill] sm:$0xff] }
 0x19a   : > { %v1812_v46 = vadd.f32 %v3440_v62, %v851_v58  ;;  %v1811_v49 = vadd.f32 %v3440_v62, %v847_v3  ;;  %v2107_v26 = vsel %vm1907_vm4, %v1807_v57, %v2007_v31  ;;  %v2305_v43 = vmax.f32 %v3770_v61, %v2304_v55 }
 0x19b   : > { %1169 = vbcast.lane.b32.xlu1 %v4237_v42, 264  ;;  %1165 = vbcast.lane.b32.xlu0 %v4237_v42, 256  ;;  %v2504_v32 = vadd.f32 %v2503_v33, %v2502_v34  ;;  %v2205_v7 = vsel %vm341_vm1, %v2107_v26, -inf  ;;  %v2404_v4 = vsel %vm341_vm1, %v2107_v26, 0.0  ;;  %v2010_v63 = vmul.f32 0.1, %v1810_v19 }
 0x19c   : > { %v2206_v8 = vmax.f32 %v3774_v36, %v2205_v7  ;;  %v2405_v62 = vadd.f32 %v2404_v4, %v2403_v20  ;;  %vm1909_vm6 = vcmp.gt.f32.partialorder %v1809_v38, 0.0  ;;  %v2009_v57 = vmul.f32 0.1, %v1809_v38  ;;  %v4241_v42 = vld [vmem:[#allocation26_spill] sm:$0xff] }
 0x19d   : > { %v862_v10 = vpop.permute.xlu1 %861  ;;  %v858_v2 = vpop.permute.xlu0 %857  ;;  %vm1912_vm7 = vcmp.gt.f32.partialorder %v1812_v46, 0.0  ;;  %v2012_v23 = vmul.f32 0.1, %v1812_v46  ;;  %vm1911_vm8 = vcmp.gt.f32.partialorder %v1811_v49, 0.0  ;;  %v2110_v53 = vsel %vm1910_vm5, %v1810_v19, %v2010_v63 }
 0x19e   : > { %v2011_v24 = vmul.f32 0.1, %v1811_v49  ;;  %v1814_v13 = vadd.f32 %v4238_v54, %v862_v10  ;;  %v1813_v61 = vadd.f32 %v4238_v54, %v858_v2  ;;  %v2306_v6 = vsel %vm341_vm1, %v2110_v53, -inf }
 0x19f   : > { %1180 = vbcast.lane.b32.xlu1 %v4239_v50, 264  ;;  %1176 = vbcast.lane.b32.xlu0 %v4239_v50, 256  ;;  %v2505_v16 = vsel %vm341_vm1, %v2110_v53, 0.0  ;;  %v2109_v17 = vsel %vm1909_vm6, %v1809_v38, %v2009_v57  ;;  %v2112_v18 = vsel %vm1912_vm7, %v1812_v46, %v2012_v23  ;;  %v3804_v36 = vmax.f32 %v2303_v25, %v2306_v6 }
 0x1a0   : > { %v2506_v52 = vadd.f32 %v2505_v16, %v2504_v32  ;;  %v2207_v60 = vsel %vm341_vm1, %v2109_v17, -inf  ;;  %v2406_v1 = vsel %vm341_vm1, %v2109_v17, 0.0  ;;  %v2308_v39 = vsel %vm341_vm1, %v2112_v18, -inf  ;;  %v4243_v16 = vld [vmem:[#allocation28_spill] sm:$0xff] }
 0x1a1   : > { %v873_v34 = vpop.permute.xlu1 %872  ;;  %v869_v22 = vpop.permute.xlu0 %868  ;;  %v3808_v44 = vmax.f32 %v2204_v51, %v2207_v60  ;;  %v2407_v45 = vadd.f32 %v2406_v1, %v2405_v62  ;;  %v2507_v59 = vsel %vm341_vm1, %v2112_v18, 0.0  ;;  %v3812_v20 = vmax.f32 %v2305_v43, %v2308_v39 }
 0x1a2   : > { %v2508_v31 = vadd.f32 %v2507_v59, %v2506_v52  ;;  %v2111_v25 = vsel %vm1911_vm8, %v1811_v49, %v2011_v24  ;;  %vm1914_vm9 = vcmp.gt.f32.partialorder %v1814_v13, 0.0  ;;  %v2014_v58 = vmul.f32 0.1, %v1814_v13 }
 0x1a3   : > { %1191 = vbcast.lane.b32.xlu1 %v4240_v5, 264  ;;  %1187 = vbcast.lane.b32.xlu0 %v4240_v5, 256  ;;  %v2209_v19 = vsel %vm341_vm1, %v2111_v25, -inf  ;;  %v2408_v51 = vsel %vm341_vm1, %v2111_v25, 0.0  ;;  %vm1913_vm10 = vcmp.gt.f32.partialorder %v1813_v61, 0.0  ;;  %v1816_v46 = vadd.f32 %v3453_v37, %v873_v34 }
 0x1a4   : > { %v3819_v3 = vmax.f32 %v2206_v8, %v2209_v19  ;;  %v2409_v47 = vadd.f32 %v2408_v51, %v2407_v45  ;;  %v2013_v38 = vmul.f32 0.1, %v1813_v61  ;;  %v2114_v49 = vsel %vm1914_vm9, %v1814_v13, %v2014_v58  ;;  %v4242_v8 = vld [vmem:[#allocation24_spill] sm:$0xff] }
 0x1a5   : > { %v884_v55 = vpop.permute.xlu1 %883  ;;  %v880_v33 = vpop.permute.xlu0 %879  ;;  %v1815_v26 = vadd.f32 %v3453_v37, %v869_v22  ;;  %v2310_v7 = vsel %vm341_vm1, %v2114_v49, -inf  ;;  %v2509_v4 = vsel %vm341_vm1, %v2114_v49, 0.0  ;;  %vm1916_vm11 = vcmp.gt.f32.partialorder %v1816_v46, 0.0 }
 0x1a6   : > { %v1818_v43 = vadd.f32 %v4241_v42, %v884_v55  ;;  %v1817_v32 = vadd.f32 %v4241_v42, %v880_v33  ;;  %v2113_v62 = vsel %vm1913_vm10, %v1813_v61, %v2013_v38  ;;  %v2311_v63 = vmax.f32 %v3804_v36, %v2310_v7 }
 0x1a7   : > { %1202 = vbcast.lane.b32.xlu1 %v4242_v8, 264  ;;  %1198 = vbcast.lane.b32.xlu0 %v4242_v8, 256  ;;  %v2510_v10 = vadd.f32 %v2509_v4, %v2508_v31  ;;  %v2211_v2 = vsel %vm341_vm1, %v2113_v62, -inf  ;;  %v2410_v37 = vsel %vm341_vm1, %v2113_v62, 0.0  ;;  %v2016_v53 = vmul.f32 0.1, %v1816_v46 }
 0x1a8   : > { %v2212_v57 = vmax.f32 %v3808_v44, %v2211_v2  ;;  %v2411_v23 = vadd.f32 %v2410_v37, %v2409_v47  ;;  %vm1915_vm12 = vcmp.gt.f32.partialorder %v1815_v26, 0.0  ;;  %v2015_v13 = vmul.f32 0.1, %v1815_v26 }
 0x1a9   : > { %v895_v24 = vpop.permute.xlu1 %894  ;;  %v891_v54 = vpop.permute.xlu0 %890  ;;  %vm1918_vm13 = vcmp.gt.f32.partialorder %v1818_v43, 0.0  ;;  %v2018_v61 = vmul.f32 0.1, %v1818_v43  ;;  %vm1917_vm14 = vcmp.gt.f32.partialorder %v1817_v32, 0.0  ;;  %v2116_v50 = vsel %vm1916_vm11, %v1816_v46, %v2016_v53 }
 0x1aa   : > { %v2017_v6 = vmul.f32 0.1, %v1817_v32  ;;  %v1820_v17 = vadd.f32 %v4243_v16, %v895_v24  ;;  %v1819_v18 = vadd.f32 %v4243_v16, %v891_v54  ;;  %v2312_v36 = vsel %vm341_vm1, %v2116_v50, -inf }
 0x1ab   : > { %v2511_v52 = vsel %vm341_vm1, %v2116_v50, 0.0  ;;  %v2115_v60 = vsel %vm1915_vm12, %v1815_v26, %v2015_v13  ;;  %v2118_v1 = vsel %vm1918_vm13, %v1818_v43, %v2018_v61  ;;  %v2313_v34 = vmax.f32 %v3812_v20, %v2312_v36 }
 0x1ac   : > { %v2512_v22 = vadd.f32 %v2511_v52, %v2510_v10  ;;  %v2213_v44 = vsel %vm341_vm1, %v2115_v60, -inf  ;;  %v2412_v45 = vsel %vm341_vm1, %v2115_v60, 0.0  ;;  %v2314_v5 = vsel %vm341_vm1, %v2118_v1, -inf }
 0x1ad   : > { %v906_v39 = vpop.permute.xlu1 %905  ;;  %v902_v59 = vpop.permute.xlu0 %901  ;;  %v2214_v31 = vmax.f32 %v3819_v3, %v2213_v44  ;;  %v2413_v25 = vadd.f32 %v2412_v45, %v2411_v23  ;;  %v2513_v19 = vsel %vm341_vm1, %v2118_v1, 0.0  ;;  %v3844_v51 = vmax.f32 %v2311_v63, %v2314_v5 }
 0x1ae   : > { %v2514_v58 = vadd.f32 %v2513_v19, %v2512_v22  ;;  %v2117_v47 = vsel %vm1917_vm14, %v1817_v32, %v2017_v6  ;;  %vm1920_vm15 = vcmp.gt.f32.partialorder %v1820_v17, 0.0  ;;  %v2020_v46 = vmul.f32 0.1, %v1820_v17  ;;  %v4244_v6 = vld [vmem:[#allocation25_spill] sm:$0xff] }
 0x1af   : > { %v2215_v20 = vsel %vm341_vm1, %v2117_v47, -inf  ;;  %v2414_v38 = vsel %vm341_vm1, %v2117_v47, 0.0  ;;  %vm1919_vm0 = vcmp.gt.f32.partialorder %v1819_v18, 0.0  ;;  %v2019_v33 = vmul.f32 0.1, %v1819_v18 }
 0x1b0   : > { %v3849_v55 = vmax.f32 %v2212_v57, %v2215_v20  ;;  %v2415_v3 = vadd.f32 %v2414_v38, %v2413_v25  ;;  %v1822_v49 = vadd.f32 %v3470_v0, %v906_v39  ;;  %v2120_v43 = vsel %vm1920_vm15, %v1820_v17, %v2020_v46 }
 0x1b1   : > { %v917_v26 = vpop.permute.xlu1 %916  ;;  %v913_v42 = vpop.permute.xlu0 %912  ;;  %v1821_v7 = vadd.f32 %v3470_v0, %v902_v59  ;;  %v2316_v62 = vsel %vm341_vm1, %v2120_v43, -inf  ;;  %v2515_v8 = vsel %vm341_vm1, %v2120_v43, 0.0  ;;  %v2119_v63 = vsel %vm1919_vm0, %v1819_v18, %v2019_v33 }
 0x1b2   : > { %v1824_v32 = vadd.f32 %v3479_v41, %v917_v26  ;;  %v1823_v4 = vadd.f32 %v3479_v41, %v913_v42  ;;  %vm1922_vm2 = vcmp.gt.f32.partialorder %v1822_v49, 0.0  ;;  %v3857_v10 = vmax.f32 %v2313_v34, %v2316_v62 }
 0x1b3   : > { %v2516_v2 = vadd.f32 %v2515_v8, %v2514_v58  ;;  %v2217_v37 = vsel %vm341_vm1, %v2119_v63, -inf  ;;  %v2416_v57 = vsel %vm341_vm1, %v2119_v63, 0.0  ;;  %v2022_v53 = vmul.f32 0.1, %v1822_v49 }
 0x1b4   : > { %v3861_v23 = vmax.f32 %v2214_v31, %v2217_v37  ;;  %v2417_v0 = vadd.f32 %v2416_v57, %v2415_v3  ;;  %vm1921_vm3 = vcmp.gt.f32.partialorder %v1821_v7, 0.0  ;;  %v2021_v54 = vmul.f32 0.1, %v1821_v7 }
 0x1b5   : > { %v928_v24 = vpop.permute.xlu1 %927  ;;  %v924_v41 = vpop.permute.xlu0 %923  ;;  %vm1924_vm4 = vcmp.gt.f32.partialorder %v1824_v32, 0.0  ;;  %v2024_v13 = vmul.f32 0.1, %v1824_v32  ;;  %vm1923_vm5 = vcmp.gt.f32.partialorder %v1823_v4, 0.0  ;;  %v2122_v61 = vsel %vm1922_vm2, %v1822_v49, %v2022_v53 }
 0x1b6   : > { %v2023_v50 = vmul.f32 0.1, %v1823_v4  ;;  %v1826_v16 = vadd.f32 %v4244_v6, %v928_v24  ;;  %v1825_v17 = vadd.f32 %v4244_v6, %v924_v41  ;;  %v2318_v18 = vsel %vm341_vm1, %v2122_v61, -inf }
 0x1b7   : > { %v2517_v36 = vsel %vm341_vm1, %v2122_v61, 0.0  ;;  %v2121_v52 = vsel %vm1921_vm3, %v1821_v7, %v2021_v54  ;;  %v2124_v60 = vsel %vm1924_vm4, %v1824_v32, %v2024_v13  ;;  %v2319_v1 = vmax.f32 %v3844_v51, %v2318_v18  ;;  %v4245_v7 = vld [vmem:[#allocation27_spill] sm:$0xff] }
 0x1b8   : > { %v2518_v34 = vadd.f32 %v2517_v36, %v2516_v2  ;;  %v2219_v22 = vsel %vm341_vm1, %v2121_v52, -inf  ;;  %v2418_v44 = vsel %vm341_vm1, %v2121_v52, 0.0  ;;  %v2320_v25 = vsel %vm341_vm1, %v2124_v60, -inf }
 0x1b9   : > { %v939_v45 = vpop.permute.xlu1 %938  ;;  %v935_v39 = vpop.permute.xlu0 %934  ;;  %v2220_v59 = vmax.f32 %v3849_v55, %v2219_v22  ;;  %v2419_v31 = vadd.f32 %v2418_v44, %v2417_v0  ;;  %v2519_v5 = vsel %vm341_vm1, %v2124_v60, 0.0  ;;  %v2321_v19 = vmax.f32 %v3857_v10, %v2320_v25 }
 0x1ba   : > { %v2520_v58 = vadd.f32 %v2519_v5, %v2518_v34  ;;  %v2123_v47 = vsel %vm1923_vm5, %v1823_v4, %v2023_v50  ;;  %vm1926_vm6 = vcmp.gt.f32.partialorder %v1826_v16, 0.0  ;;  %v2026_v38 = vmul.f32 0.1, %v1826_v16  ;;  %v4246_v50 = vld [vmem:[#allocation30_spill] sm:$0xff] }
 0x1bb   : > { %v2221_v51 = vsel %vm341_vm1, %v2123_v47, -inf  ;;  %v2420_v20 = vsel %vm341_vm1, %v2123_v47, 0.0  ;;  %vm1925_vm7 = vcmp.gt.f32.partialorder %v1825_v17, 0.0  ;;  %v2025_v3 = vmul.f32 0.1, %v1825_v17 }
 0x1bc   : > { %v2222_v46 = vmax.f32 %v3861_v23, %v2221_v51  ;;  %v2421_v55 = vadd.f32 %v2420_v20, %v2419_v31  ;;  %v1828_v33 = vadd.f32 %v3473_v15, %v939_v45  ;;  %v2126_v42 = vsel %vm1926_vm6, %v1826_v16, %v2026_v38 }
 0x1bd   : > { %v950_v49 = vpop.permute.xlu1 %949  ;;  %v946_v26 = vpop.permute.xlu0 %945  ;;  %v1827_v43 = vadd.f32 %v3473_v15, %v935_v39  ;;  %v2322_v62 = vsel %vm341_vm1, %v2126_v42, -inf  ;;  %v2521_v8 = vsel %vm341_vm1, %v2126_v42, 0.0  ;;  %v2125_v63 = vsel %vm1925_vm7, %v1825_v17, %v2025_v3  ;;  %v4247_v3 = vld [vmem:[#allocation29_spill] sm:$0xff] }
 0x1be   : > { %v1830_v32 = vadd.f32 %v4245_v7, %v950_v49  ;;  %v1829_v4 = vadd.f32 %v4245_v7, %v946_v26  ;;  %vm1928_vm8 = vcmp.gt.f32.partialorder %v1828_v33, 0.0  ;;  %v3884_v10 = vmax.f32 %v2319_v1, %v2322_v62 }
 0x1bf   : > { %v2522_v2 = vadd.f32 %v2521_v8, %v2520_v58  ;;  %v2223_v37 = vsel %vm341_vm1, %v2125_v63, -inf  ;;  %v2422_v57 = vsel %vm341_vm1, %v2125_v63, 0.0  ;;  %v2028_v0 = vmul.f32 0.1, %v1828_v33 }
 0x1c0   : > { %v3888_v23 = vmax.f32 %v2220_v59, %v2223_v37  ;;  %v2423_v15 = vadd.f32 %v2422_v57, %v2421_v55  ;;  %vm1927_vm9 = vcmp.gt.f32.partialorder %v1827_v43, 0.0  ;;  %v2027_v41 = vmul.f32 0.1, %v1827_v43 }
 0x1c1   : > { %v961_v53 = vpop.permute.xlu1 %960  ;;  %v957_v24 = vpop.permute.xlu0 %956  ;;  %vm1930_vm10 = vcmp.gt.f32.partialorder %v1830_v32, 0.0  ;;  %v2030_v54 = vmul.f32 0.1, %v1830_v32  ;;  %vm1929_vm11 = vcmp.gt.f32.partialorder %v1829_v4, 0.0  ;;  %v2128_v13 = vsel %vm1928_vm8, %v1828_v33, %v2028_v0 }
 0x1c2   : > { %v2029_v61 = vmul.f32 0.1, %v1829_v4  ;;  %v1832_v6 = vadd.f32 %v4246_v50, %v961_v53  ;;  %v1831_v16 = vadd.f32 %v4246_v50, %v957_v24  ;;  %v2324_v17 = vsel %vm341_vm1, %v2128_v13, -inf }
 0x1c3   : > { %v2523_v18 = vsel %vm341_vm1, %v2128_v13, 0.0  ;;  %v2127_v36 = vsel %vm1927_vm9, %v1827_v43, %v2027_v41  ;;  %v2130_v52 = vsel %vm1930_vm10, %v1830_v32, %v2030_v54  ;;  %v3894_v60 = vmax.f32 %v2321_v19, %v2324_v17  ;;  %v4248_v13 = vld [vmem:[#allocation31_spill] sm:$0xff] }
 0x1c4   : > { %v2524_v1 = vadd.f32 %v2523_v18, %v2522_v2  ;;  %v2225_v34 = vsel %vm341_vm1, %v2127_v36, -inf  ;;  %v2424_v22 = vsel %vm341_vm1, %v2127_v36, 0.0  ;;  %v2326_v31 = vsel %vm341_vm1, %v2130_v52, -inf }
 0x1c5   : > { %v972_v44 = vpop.permute.xlu1 %971  ;;  %v968_v45 = vpop.permute.xlu0 %967  ;;  %v3898_v39 = vmax.f32 %v2222_v46, %v2225_v34  ;;  %v2425_v59 = vadd.f32 %v2424_v22, %v2423_v15  ;;  %v2525_v25 = vsel %vm341_vm1, %v2130_v52, 0.0  ;;  %v2327_v5 = vmax.f32 %v3884_v10, %v2326_v31 }
 0x1c6   : > { %v2526_v58 = vadd.f32 %v2525_v25, %v2524_v1  ;;  %v2129_v19 = vsel %vm1929_vm11, %v1829_v4, %v2029_v61  ;;  %vm1932_vm12 = vcmp.gt.f32.partialorder %v1832_v6, 0.0  ;;  %v2032_v20 = vmul.f32 0.1, %v1832_v6 }
 0x1c7   : > { %v2227_v47 = vsel %vm341_vm1, %v2129_v19, -inf  ;;  %v2426_v51 = vsel %vm341_vm1, %v2129_v19, 0.0  ;;  %vm1931_vm13 = vcmp.gt.f32.partialorder %v1831_v16, 0.0  ;;  %v2031_v55 = vmul.f32 0.1, %v1831_v16 }
 0x1c8   : > { %v2228_v38 = vmax.f32 %v3888_v23, %v2227_v47  ;;  %v2427_v46 = vadd.f32 %v2426_v51, %v2425_v59  ;;  %v1834_v33 = vadd.f32 %v4247_v3, %v972_v44  ;;  %v2132_v42 = vsel %vm1932_vm12, %v1832_v6, %v2032_v20 }
 0x1c9   : > { %v983_v49 = vpop.permute.xlu1 %982  ;;  %v979_v26 = vpop.permute.xlu0 %978  ;;  %v1833_v43 = vadd.f32 %v4247_v3, %v968_v45  ;;  %v2328_v4 = vsel %vm341_vm1, %v2132_v42, -inf  ;;  %v2527_v62 = vsel %vm341_vm1, %v2132_v42, 0.0  ;;  %v2131_v8 = vsel %vm1931_vm13, %v1831_v16, %v2031_v55 }
 0x1ca   : > { %v1836_v7 = vadd.f32 %v3499_v30, %v983_v49  ;;  %v1835_v32 = vadd.f32 %v3499_v30, %v979_v26  ;;  %vm1934_vm14 = vcmp.gt.f32.partialorder %v1834_v33, 0.0  ;;  %v2329_v63 = vmax.f32 %v3894_v60, %v2328_v4  ;;  %v4249_v26 = vld [vmem:[#allocation32_spill] sm:$0xff] }
 0x1cb   : > { %v2528_v10 = vadd.f32 %v2527_v62, %v2526_v58  ;;  %v2229_v2 = vsel %vm341_vm1, %v2131_v8, -inf  ;;  %v2428_v37 = vsel %vm341_vm1, %v2131_v8, 0.0  ;;  %v2034_v15 = vmul.f32 0.1, %v1834_v33 }
 0x1cc   : > { %v2230_v57 = vmax.f32 %v3898_v39, %v2229_v2  ;;  %v2429_v23 = vadd.f32 %v2428_v37, %v2427_v46  ;;  %vm1933_vm15 = vcmp.gt.f32.partialorder %v1833_v43, 0.0  ;;  %v2033_v53 = vmul.f32 0.1, %v1833_v43 }
 0x1cd   : > { %v994_v0 = vpop.permute.xlu1 %993  ;;  %v990_v30 = vpop.permute.xlu0 %989  ;;  %vm1936_vm0 = vcmp.gt.f32.partialorder %v1836_v7, 0.0  ;;  %v2036_v24 = vmul.f32 0.1, %v1836_v7  ;;  %vm1935_vm2 = vcmp.gt.f32.partialorder %v1835_v32, 0.0  ;;  %v2134_v41 = vsel %vm1934_vm14, %v1834_v33, %v2034_v15 }
 0x1ce   : > { %v2035_v54 = vmul.f32 0.1, %v1835_v32  ;;  %v1838_v61 = vadd.f32 %v4248_v13, %v994_v0  ;;  %v1837_v50 = vadd.f32 %v4248_v13, %v990_v30  ;;  %v2330_v6 = vsel %vm341_vm1, %v2134_v41, -inf }
 0x1cf   : > { %v2529_v16 = vsel %vm341_vm1, %v2134_v41, 0.0  ;;  %v2133_v17 = vsel %vm1933_vm15, %v1833_v43, %v2033_v53  ;;  %v2136_v18 = vsel %vm1936_vm0, %v1836_v7, %v2036_v24  ;;  %v3921_v36 = vmax.f32 %v2327_v5, %v2330_v6  ;;  %v4250_v24 = vld [vmem:[#allocation33_spill] sm:$0xff] }
 0x1d0   : > { %v2530_v52 = vadd.f32 %v2529_v16, %v2528_v10  ;;  %v2231_v60 = vsel %vm341_vm1, %v2133_v17, -inf  ;;  %v2430_v1 = vsel %vm341_vm1, %v2133_v17, 0.0  ;;  %v2332_v39 = vsel %vm341_vm1, %v2136_v18, -inf }
 0x1d1   : > { %v1005_v34 = vpop.permute.xlu1 %1004  ;;  %v1001_v22 = vpop.permute.xlu0 %1000  ;;  %v3925_v44 = vmax.f32 %v2228_v38, %v2231_v60  ;;  %v2431_v45 = vadd.f32 %v2430_v1, %v2429_v23  ;;  %v2531_v59 = vsel %vm341_vm1, %v2136_v18, 0.0  ;;  %v3929_v31 = vmax.f32 %v2329_v63, %v2332_v39 }
 0x1d2   : > { %v2532_v25 = vadd.f32 %v2531_v59, %v2530_v52  ;;  %v2135_v5 = vsel %vm1935_vm2, %v1835_v32, %v2035_v54  ;;  %vm1938_vm3 = vcmp.gt.f32.partialorder %v1838_v61, 0.0  ;;  %v2038_v47 = vmul.f32 0.1, %v1838_v61 }
 0x1d3   : > { %v2233_v58 = vsel %vm341_vm1, %v2135_v5, -inf  ;;  %v2432_v19 = vsel %vm341_vm1, %v2135_v5, 0.0  ;;  %vm1937_vm4 = vcmp.gt.f32.partialorder %v1837_v50, 0.0  ;;  %v2037_v38 = vmul.f32 0.1, %v1837_v50 }
 0x1d4   : > { %v3934_v51 = vmax.f32 %v2230_v57, %v2233_v58  ;;  %v2433_v20 = vadd.f32 %v2432_v19, %v2431_v45  ;;  %v1840_v46 = vadd.f32 %v3509_v56, %v1005_v34  ;;  %v2138_v33 = vsel %vm1938_vm3, %v1838_v61, %v2038_v47 }
 0x1d5   : > { %v1016_v55 = vpop.permute.xlu1 %1015  ;;  %v1012_v3 = vpop.permute.xlu0 %1011  ;;  %v1839_v49 = vadd.f32 %v3509_v56, %v1001_v22  ;;  %v2334_v7 = vsel %vm341_vm1, %v2138_v33, -inf  ;;  %v2533_v32 = vsel %vm341_vm1, %v2138_v33, 0.0  ;;  %v2137_v4 = vsel %vm1937_vm4, %v1837_v50, %v2037_v38 }
 0x1d6   : > { %v1842_v42 = vadd.f32 %v4249_v26, %v1016_v55  ;;  %v1841_v43 = vadd.f32 %v4249_v26, %v1012_v3  ;;  %vm1940_vm5 = vcmp.gt.f32.partialorder %v1840_v46, 0.0  ;;  %v2335_v62 = vmax.f32 %v3921_v36, %v2334_v7 }
 0x1d7   : > { %v2534_v8 = vadd.f32 %v2533_v32, %v2532_v25  ;;  %v2235_v63 = vsel %vm341_vm1, %v2137_v4, -inf  ;;  %v2434_v10 = vsel %vm341_vm1, %v2137_v4, 0.0  ;;  %v2040_v37 = vmul.f32 0.1, %v1840_v46 }
 0x1d8   : > { %v2236_v2 = vmax.f32 %v3925_v44, %v2235_v63  ;;  %v2435_v56 = vadd.f32 %v2434_v10, %v2433_v20  ;;  %vm1939_vm6 = vcmp.gt.f32.partialorder %v1839_v49, 0.0  ;;  %v2039_v15 = vmul.f32 0.1, %v1839_v49 }
 0x1d9   : > { %v1027_v57 = vpop.permute.xlu1 %1026  ;;  %v1023_v23 = vpop.permute.xlu0 %1022  ;;  %vm1942_vm7 = vcmp.gt.f32.partialorder %v1842_v42, 0.0  ;;  %v2042_v0 = vmul.f32 0.1, %v1842_v42  ;;  %vm1941_vm8 = vcmp.gt.f32.partialorder %v1841_v43, 0.0  ;;  %v2140_v30 = vsel %vm1940_vm5, %v1840_v46, %v2040_v37 }
 0x1da   : > { %v2041_v53 = vmul.f32 0.1, %v1841_v43  ;;  %v1844_v41 = vadd.f32 %v4250_v24, %v1027_v57  ;;  %v1843_v54 = vadd.f32 %v4250_v24, %v1023_v23  ;;  %v2336_v13 = vsel %vm341_vm1, %v2140_v30, -inf }
 0x1db   : > { %v2535_v61 = vsel %vm341_vm1, %v2140_v30, 0.0  ;;  %v2139_v50 = vsel %vm1939_vm6, %v1839_v49, %v2039_v15  ;;  %v2142_v6 = vsel %vm1942_vm7, %v1842_v42, %v2042_v0  ;;  %v2337_v16 = vmax.f32 %v3929_v31, %v2336_v13  ;;  %v4252_v15 = vld [vmem:[#allocation35_spill] sm:$0xff] }
 0x1dc   : > { %v2536_v17 = vadd.f32 %v2535_v61, %v2534_v8  ;;  %v2237_v18 = vsel %vm341_vm1, %v2139_v50, -inf  ;;  %v2436_v36 = vsel %vm341_vm1, %v2139_v50, 0.0  ;;  %v2338_v22 = vsel %vm341_vm1, %v2142_v6, -inf }
 0x1dd   : > { %v1038_v52 = vpop.permute.xlu1 %1037  ;;  %v1034_v60 = vpop.permute.xlu0 %1033  ;;  %v2238_v1 = vmax.f32 %v3934_v51, %v2237_v18  ;;  %v2437_v34 = vadd.f32 %v2436_v36, %v2435_v56  ;;  %v2537_v44 = vsel %vm341_vm1, %v2142_v6, 0.0  ;;  %v3956_v45 = vmax.f32 %v2335_v62, %v2338_v22  ;;  %v4251_v51 = vld [vmem:[#allocation34_spill] sm:$0xff] }
 0x1de   : > { %v2538_v39 = vadd.f32 %v2537_v44, %v2536_v17  ;;  %v2141_v59 = vsel %vm1941_vm8, %v1841_v43, %v2041_v53  ;;  %vm1944_vm9 = vcmp.gt.f32.partialorder %v1844_v41, 0.0  ;;  %v2044_v5 = vmul.f32 0.1, %v1844_v41 }
 0x1df   : > { %v2239_v31 = vsel %vm341_vm1, %v2141_v59, -inf  ;;  %v2438_v25 = vsel %vm341_vm1, %v2141_v59, 0.0  ;;  %vm1943_vm10 = vcmp.gt.f32.partialorder %v1843_v54, 0.0  ;;  %v2043_v47 = vmul.f32 0.1, %v1843_v54 }
 0x1e0   : > { %v3961_v58 = vmax.f32 %v2236_v2, %v2239_v31  ;;  %v2439_v19 = vadd.f32 %v2438_v25, %v2437_v34  ;;  %v1846_v20 = vadd.f32 %v4251_v51, %v1038_v52  ;;  %v2144_v55 = vsel %vm1944_vm9, %v1844_v41, %v2044_v5 }
 0x1e1   : > { %v1049_v38 = vpop.permute.xlu1 %1048  ;;  %v1045_v46 = vpop.permute.xlu0 %1044  ;;  %v1845_v3 = vadd.f32 %v4251_v51, %v1034_v60  ;;  %v2340_v26 = vsel %vm341_vm1, %v2144_v55, -inf  ;;  %v2539_v42 = vsel %vm341_vm1, %v2144_v55, 0.0  ;;  %v2143_v43 = vsel %vm1943_vm10, %v1843_v54, %v2043_v47 }
 0x1e2   : > { %v1848_v33 = vadd.f32 %v3526_v11, %v1049_v38  ;;  %v1847_v49 = vadd.f32 %v3526_v11, %v1045_v46  ;;  %vm1946_vm11 = vcmp.gt.f32.partialorder %v1846_v20, 0.0  ;;  %v3969_v7 = vmax.f32 %v2337_v16, %v2340_v26 }
 0x1e3   : > { %v2540_v32 = vadd.f32 %v2539_v42, %v2538_v39  ;;  %v2241_v4 = vsel %vm341_vm1, %v2143_v43, -inf  ;;  %v2440_v62 = vsel %vm341_vm1, %v2143_v43, 0.0  ;;  %v2046_v10 = vmul.f32 0.1, %v1846_v20 }
 0x1e4   : > { %v3973_v8 = vmax.f32 %v2238_v1, %v2241_v4  ;;  %v2441_v63 = vadd.f32 %v2440_v62, %v2439_v19  ;;  %vm1945_vm12 = vcmp.gt.f32.partialorder %v1845_v3, 0.0  ;;  %v2045_v56 = vmul.f32 0.1, %v1845_v3 }
 0x1e5   : > { %v1060_v2 = vpop.permute.xlu1 %1059  ;;  %v1056_v11 = vpop.permute.xlu0 %1055  ;;  %vm1948_vm13 = vcmp.gt.f32.partialorder %v1848_v33, 0.0  ;;  %v2048_v37 = vmul.f32 0.1, %v1848_v33  ;;  %vm1947_vm14 = vcmp.gt.f32.partialorder %v1847_v49, 0.0  ;;  %v2146_v57 = vsel %vm1946_vm11, %v1846_v20, %v2046_v10 }
 0x1e6   : > { %v2047_v23 = vmul.f32 0.1, %v1847_v49  ;;  %v1850_v0 = vadd.f32 %v4252_v15, %v1060_v2  ;;  %v1849_v30 = vadd.f32 %v4252_v15, %v1056_v11  ;;  %v2342_v53 = vsel %vm341_vm1, %v2146_v57, -inf }
 0x1e7   : > { %v2541_v24 = vsel %vm341_vm1, %v2146_v57, 0.0  ;;  %v2145_v41 = vsel %vm1945_vm12, %v1845_v3, %v2045_v56  ;;  %v2148_v54 = vsel %vm1948_vm13, %v1848_v33, %v2048_v37  ;;  %v2343_v13 = vmax.f32 %v3956_v45, %v2342_v53 }
 0x1e8   : > { %v2542_v61 = vadd.f32 %v2541_v24, %v2540_v32  ;;  %v2243_v50 = vsel %vm341_vm1, %v2145_v41, -inf  ;;  %v2442_v6 = vsel %vm341_vm1, %v2145_v41, 0.0  ;;  %v2344_v52 = vsel %vm341_vm1, %v2148_v54, -inf }
 0x1e9   : > { %v1071_v16 = vpop.permute.xlu1 %1070  ;;  %v1067_v17 = vpop.permute.xlu0 %1066  ;;  %v2244_v18 = vmax.f32 %v3961_v58, %v2243_v50  ;;  %v2443_v36 = vadd.f32 %v2442_v6, %v2441_v63  ;;  %v2543_v60 = vsel %vm341_vm1, %v2148_v54, 0.0  ;;  %v2345_v1 = vmax.f32 %v3969_v7, %v2344_v52 }
 0x1ea   : > { %v2544_v34 = vadd.f32 %v2543_v60, %v2542_v61  ;;  %v2147_v22 = vsel %vm1947_vm14, %v1847_v49, %v2047_v23  ;;  %vm1950_vm15 = vcmp.gt.f32.partialorder %v1850_v0, 0.0  ;;  %v2050_v39 = vmul.f32 0.1, %v1850_v0 }
 0x1eb   : > { %v2245_v44 = vsel %vm341_vm1, %v2147_v22, -inf  ;;  %v2444_v45 = vsel %vm341_vm1, %v2147_v22, 0.0  ;;  %vm1949_vm0 = vcmp.gt.f32.partialorder %v1849_v30, 0.0  ;;  %v2049_v25 = vmul.f32 0.1, %v1849_v30 }
 0x1ec   : > { %v2246_v59 = vmax.f32 %v3973_v8, %v2245_v44  ;;  %v2445_v31 = vadd.f32 %v2444_v45, %v2443_v36  ;;  %v1852_v5 = vadd.f32 %v3533_v14, %v1071_v16  ;;  %v2150_v47 = vsel %vm1950_vm15, %v1850_v0, %v2050_v39 }
 0x1ed   : > { %v1082_v58 = vpop.permute.xlu1 %1081  ;;  %v1078_v19 = vpop.permute.xlu0 %1077  ;;  %v1851_v51 = vadd.f32 %v3533_v14, %v1067_v17  ;;  %v2346_v46 = vsel %vm341_vm1, %v2150_v47, -inf  ;;  %v2545_v55 = vsel %vm341_vm1, %v2150_v47, 0.0  ;;  %v2149_v3 = vsel %vm1949_vm0, %v1849_v30, %v2049_v25 }
 0x1ee   : > { %v1854_v20 = vadd.f32 %v3540_v35, %v1082_v58  ;;  %v1853_v38 = vadd.f32 %v3540_v35, %v1078_v19  ;;  %vm1952_vm2 = vcmp.gt.f32.partialorder %v1852_v5, 0.0  ;;  %v3996_v33 = vmax.f32 %v2343_v13, %v2346_v46 }
 0x1ef   : > { %v2546_v49 = vadd.f32 %v2545_v55, %v2544_v34  ;;  %v2247_v26 = vsel %vm341_vm1, %v2149_v3, -inf  ;;  %v2446_v42 = vsel %vm341_vm1, %v2149_v3, 0.0  ;;  %v2052_v7 = vmul.f32 0.1, %v1852_v5 }
 0x1f0   : > { %v4000_v43 = vmax.f32 %v2244_v18, %v2247_v26  ;;  %v2447_v14 = vadd.f32 %v2446_v42, %v2445_v31  ;;  %vm1951_vm3 = vcmp.gt.f32.partialorder %v1851_v51, 0.0  ;;  %v2051_v4 = vmul.f32 0.1, %v1851_v51 }
 0x1f1   : > { %v1093_v32 = vpop.permute.xlu1 %1092  ;;  %v1089_v35 = vpop.permute.xlu0 %1088  ;;  %vm1954_vm4 = vcmp.gt.f32.partialorder %v1854_v20, 0.0  ;;  %v2054_v62 = vmul.f32 0.1, %v1854_v20  ;;  %vm1953_vm5 = vcmp.gt.f32.partialorder %v1853_v38, 0.0  ;;  %v2152_v8 = vsel %vm1952_vm2, %v1852_v5, %v2052_v7  ;;  %v4255_v7 = vld [vmem:[#allocation38_spill] sm:$0xff] }
 0x1f2   : > { %v2053_v63 = vmul.f32 0.1, %v1853_v38  ;;  %v1856_v10 = vadd.f32 %v3550_v27, %v1093_v32  ;;  %v1855_v2 = vadd.f32 %v3550_v27, %v1089_v35  ;;  %v2348_v11 = vsel %vm341_vm1, %v2152_v8, -inf }
 0x1f3   : > { %v2547_v56 = vsel %vm341_vm1, %v2152_v8, 0.0  ;;  %v2151_v37 = vsel %vm1951_vm3, %v1851_v51, %v2051_v4  ;;  %v2154_v57 = vsel %vm1954_vm4, %v1854_v20, %v2054_v62  ;;  %v4006_v23 = vmax.f32 %v2345_v1, %v2348_v11  ;;  %v4253_v1 = vld [vmem:[#allocation36_spill] sm:$0xff] }
 0x1f4   : > { %v2548_v15 = vadd.f32 %v2547_v56, %v2546_v49  ;;  %v2249_v0 = vsel %vm341_vm1, %v2151_v37, -inf  ;;  %v2448_v30 = vsel %vm341_vm1, %v2151_v37, 0.0  ;;  %v2350_v27 = vsel %vm341_vm1, %v2154_v57, -inf }
 0x1f5   : > { %v1104_v53 = vpop.permute.xlu1 %1103  ;;  %v1100_v24 = vpop.permute.xlu0 %1099  ;;  %v4010_v41 = vmax.f32 %v2246_v59, %v2249_v0  ;;  %v2449_v54 = vadd.f32 %v2448_v30, %v2447_v14  ;;  %v2549_v13 = vsel %vm341_vm1, %v2154_v57, 0.0  ;;  %v2351_v61 = vmax.f32 %v3996_v33, %v2350_v27  ;;  %v4254_v59 = vld [vmem:[#allocation37_spill] sm:$0xff] }
 0x1f6   : > { %v2550_v50 = vadd.f32 %v2549_v13, %v2548_v15  ;;  %v2153_v6 = vsel %vm1953_vm5, %v1853_v38, %v2053_v63  ;;  %vm1956_vm6 = vcmp.gt.f32.partialorder %v1856_v10, 0.0  ;;  %v2056_v18 = vmul.f32 0.1, %v1856_v10 }
 0x1f7   : > { %v2251_v16 = vsel %vm341_vm1, %v2153_v6, -inf  ;;  %v2450_v17 = vsel %vm341_vm1, %v2153_v6, 0.0  ;;  %vm1955_vm7 = vcmp.gt.f32.partialorder %v1855_v2, 0.0  ;;  %v2055_v60 = vmul.f32 0.1, %v1855_v2 }
 0x1f8   : > { %v2252_v36 = vmax.f32 %v4000_v43, %v2251_v16  ;;  %v2451_v52 = vadd.f32 %v2450_v17, %v2449_v54  ;;  %v1858_v34 = vadd.f32 %v4253_v1, %v1104_v53  ;;  %v2156_v45 = vsel %vm1956_vm6, %v1856_v10, %v2056_v18 }
 0x1f9   : > { %v1115_v22 = vpop.permute.xlu1 %1114  ;;  %v1111_v44 = vpop.permute.xlu0 %1110  ;;  %v1857_v39 = vadd.f32 %v4253_v1, %v1100_v24  ;;  %v2352_v5 = vsel %vm341_vm1, %v2156_v45, -inf  ;;  %v2551_v58 = vsel %vm341_vm1, %v2156_v45, 0.0  ;;  %v2155_v19 = vsel %vm1955_vm7, %v1855_v2, %v2055_v60 }
 0x1fa   : > { %v1860_v31 = vadd.f32 %v4254_v59, %v1115_v22  ;;  %v1859_v25 = vadd.f32 %v4254_v59, %v1111_v44  ;;  %vm1958_vm8 = vcmp.gt.f32.partialorder %v1858_v34, 0.0  ;;  %v2353_v47 = vmax.f32 %v4006_v23, %v2352_v5 }
 0x1fb   : > { %v2552_v51 = vadd.f32 %v2551_v58, %v2550_v50  ;;  %v2253_v20 = vsel %vm341_vm1, %v2155_v19, -inf  ;;  %v2452_v38 = vsel %vm341_vm1, %v2155_v19, 0.0  ;;  %v2058_v3 = vmul.f32 0.1, %v1858_v34 }
 0x1fc   : > { %v2254_v46 = vmax.f32 %v4010_v41, %v2253_v20  ;;  %v2453_v55 = vadd.f32 %v2452_v38, %v2451_v52  ;;  %vm1957_vm9 = vcmp.gt.f32.partialorder %v1857_v39, 0.0  ;;  %v2057_v26 = vmul.f32 0.1, %v1857_v39 }
 0x1fd   : > { %v1126_v33 = vpop.permute.xlu1 %1125  ;;  %v1122_v49 = vpop.permute.xlu0 %1121  ;;  %vm1960_vm10 = vcmp.gt.f32.partialorder %v1860_v31, 0.0  ;;  %v2060_v42 = vmul.f32 0.1, %v1860_v31  ;;  %vm1959_vm11 = vcmp.gt.f32.partialorder %v1859_v25, 0.0  ;;  %v2158_v43 = vsel %vm1958_vm8, %v1858_v34, %v2058_v3 }
 0x1fe   : > { %v2059_v14 = vmul.f32 0.1, %v1859_v25  ;;  %v1862_v32 = vadd.f32 %v4255_v7, %v1126_v33  ;;  %v1861_v35 = vadd.f32 %v4255_v7, %v1122_v49  ;;  %v2354_v4 = vsel %vm341_vm1, %v2158_v43, -inf }
 0x1ff   : > { %v2553_v62 = vsel %vm341_vm1, %v2158_v43, 0.0  ;;  %v2157_v8 = vsel %vm1957_vm9, %v1857_v39, %v2057_v26  ;;  %v2160_v63 = vsel %vm1960_vm10, %v1860_v31, %v2060_v42  ;;  %v4033_v10 = vmax.f32 %v2351_v61, %v2354_v4 }
 0x200   : > { %v2554_v2 = vadd.f32 %v2553_v62, %v2552_v51  ;;  %v2255_v11 = vsel %vm341_vm1, %v2157_v8, -inf  ;;  %v2454_v56 = vsel %vm341_vm1, %v2157_v8, 0.0  ;;  %v2356_v0 = vsel %vm341_vm1, %v2160_v63, -inf }
 0x201   : > { %v1137_v37 = vpop.permute.xlu1 %1136  ;;  %v1133_v57 = vpop.permute.xlu0 %1132  ;;  %v4037_v23 = vmax.f32 %v2252_v36, %v2255_v11  ;;  %v2455_v15 = vadd.f32 %v2454_v56, %v2453_v55  ;;  %v2555_v30 = vsel %vm341_vm1, %v2160_v63, 0.0  ;;  %v4041_v53 = vmax.f32 %v2353_v47, %v2356_v0 }
 0x202   : > { %v2556_v24 = vadd.f32 %v2555_v30, %v2554_v2  ;;  %v2159_v41 = vsel %vm1959_vm11, %v1859_v25, %v2059_v14  ;;  %vm1962_vm12 = vcmp.gt.f32.partialorder %v1862_v32, 0.0  ;;  %v2062_v13 = vmul.f32 0.1, %v1862_v32 }
 0x203   : > { %v2257_v54 = vsel %vm341_vm1, %v2159_v41, -inf  ;;  %v2456_v27 = vsel %vm341_vm1, %v2159_v41, 0.0  ;;  %vm1961_vm13 = vcmp.gt.f32.partialorder %v1861_v35, 0.0  ;;  %v2061_v6 = vmul.f32 0.1, %v1861_v35 }
 0x204   : > { %v4046_v61 = vmax.f32 %v2254_v46, %v2257_v54  ;;  %v2457_v50 = vadd.f32 %v2456_v27, %v2455_v15  ;;  %v1864_v16 = vadd.f32 %v3557_v9, %v1137_v37  ;;  %v2162_v36 = vsel %vm1962_vm12, %v1862_v32, %v2062_v13 }
 0x205   : > { %v1148_v17 = vpop.permute.xlu1 %1147  ;;  %v1144_v18 = vpop.permute.xlu0 %1143  ;;  %v1863_v52 = vadd.f32 %v3557_v9, %v1133_v57  ;;  %v2358_v34 = vsel %vm341_vm1, %v2162_v36, -inf  ;;  %v2557_v22 = vsel %vm341_vm1, %v2162_v36, 0.0  ;;  %v2161_v44 = vsel %vm1961_vm13, %v1861_v35, %v2061_v6 }
 0x206   : > { %v1866_v60 = vadd.f32 %v3569_v28, %v1148_v17  ;;  %v1865_v1 = vadd.f32 %v3569_v28, %v1144_v18  ;;  %vm1964_vm14 = vcmp.gt.f32.partialorder %v1864_v16, 0.0  ;;  %v2359_v45 = vmax.f32 %v4033_v10, %v2358_v34 }
 0x207   : > { %v2558_v39 = vadd.f32 %v2557_v22, %v2556_v24  ;;  %v2259_v59 = vsel %vm341_vm1, %v2161_v44, -inf  ;;  %v2458_v31 = vsel %vm341_vm1, %v2161_v44, 0.0  ;;  %v2064_v5 = vmul.f32 0.1, %v1864_v16 }
 0x208   : > { %v2260_v25 = vmax.f32 %v4037_v23, %v2259_v59  ;;  %v2459_v9 = vadd.f32 %v2458_v31, %v2457_v50  ;;  %vm1963_vm15 = vcmp.gt.f32.partialorder %v1863_v52, 0.0  ;;  %v2063_v19 = vmul.f32 0.1, %v1863_v52 }
 0x209   : > { %v1159_v58 = vpop.permute.xlu1 %1158  ;;  %v1155_v28 = vpop.permute.xlu0 %1154  ;;  %vm1966_vm0 = vcmp.gt.f32.partialorder %v1866_v60, 0.0  ;;  %v2066_v47 = vmul.f32 0.1, %v1866_v60  ;;  %vm1965_vm2 = vcmp.gt.f32.partialorder %v1865_v1, 0.0  ;;  %v2164_v51 = vsel %vm1964_vm14, %v1864_v16, %v2064_v5 }
 0x20a   : > { %v2065_v20 = vmul.f32 0.1, %v1865_v1  ;;  %v1868_v38 = vadd.f32 %v3579_v40, %v1159_v58  ;;  %v1867_v46 = vadd.f32 %v3579_v40, %v1155_v28  ;;  %v2360_v55 = vsel %vm341_vm1, %v2164_v51, -inf }
 0x20b   : > { %v2559_v3 = vsel %vm341_vm1, %v2164_v51, 0.0  ;;  %v2163_v33 = vsel %vm1963_vm15, %v1863_v52, %v2063_v19  ;;  %v2166_v49 = vsel %vm1966_vm0, %v1866_v60, %v2066_v47  ;;  %v2361_v26 = vmax.f32 %v4041_v53, %v2360_v55 }
 0x20c   : > { %v2560_v42 = vadd.f32 %v2559_v3, %v2558_v39  ;;  %v2261_v43 = vsel %vm341_vm1, %v2163_v33, -inf  ;;  %v2460_v14 = vsel %vm341_vm1, %v2163_v33, 0.0  ;;  %v2362_v40 = vsel %vm341_vm1, %v2166_v49, -inf }
 0x20d   : > { %v1170_v7 = vpop.permute.xlu1 %1169  ;;  %v1166_v32 = vpop.permute.xlu0 %1165  ;;  %v2262_v35 = vmax.f32 %v4046_v61, %v2261_v43  ;;  %v2461_v4 = vadd.f32 %v2460_v14, %v2459_v9  ;;  %v2561_v62 = vsel %vm341_vm1, %v2166_v49, 0.0  ;;  %v4068_v8 = vmax.f32 %v2359_v45, %v2362_v40 }
 0x20e   : > { %v2562_v63 = vadd.f32 %v2561_v62, %v2560_v42  ;;  %v2165_v10 = vsel %vm1965_vm2, %v1865_v1, %v2065_v20  ;;  %vm1968_vm3 = vcmp.gt.f32.partialorder %v1868_v38, 0.0  ;;  %v2068_v56 = vmul.f32 0.1, %v1868_v38 }
 0x20f   : > { %v2263_v2 = vsel %vm341_vm1, %v2165_v10, -inf  ;;  %v2462_v11 = vsel %vm341_vm1, %v2165_v10, 0.0  ;;  %vm1967_vm4 = vcmp.gt.f32.partialorder %v1867_v46, 0.0  ;;  %v2067_v23 = vmul.f32 0.1, %v1867_v46 }
 0x210   : > { %v4073_v37 = vmax.f32 %v2260_v25, %v2263_v2  ;;  %v2463_v57 = vadd.f32 %v2462_v11, %v2461_v4  ;;  %v1870_v15 = vadd.f32 %v3576_v48, %v1170_v7  ;;  %v2168_v53 = vsel %vm1968_vm3, %v1868_v38, %v2068_v56 }
 0x211   : > { %v1181_v0 = vpop.permute.xlu1 %1180  ;;  %v1177_v30 = vpop.permute.xlu0 %1176  ;;  %v1869_v24 = vadd.f32 %v3576_v48, %v1166_v32  ;;  %v2364_v27 = vsel %vm341_vm1, %v2168_v53, -inf  ;;  %v2563_v13 = vsel %vm341_vm1, %v2168_v53, 0.0  ;;  %v2167_v61 = vsel %vm1967_vm4, %v1867_v46, %v2067_v23 }
 0x212   : > { %v1872_v41 = vadd.f32 %v3584_v12, %v1181_v0  ;;  %v1871_v54 = vadd.f32 %v3584_v12, %v1177_v30  ;;  %vm1970_vm5 = vcmp.gt.f32.partialorder %v1870_v15, 0.0  ;;  %v4081_v50 = vmax.f32 %v2361_v26, %v2364_v27 }
 0x213   : > { %v2564_v6 = vadd.f32 %v2563_v13, %v2562_v63  ;;  %v2265_v16 = vsel %vm341_vm1, %v2167_v61, -inf  ;;  %v2464_v17 = vsel %vm341_vm1, %v2167_v61, 0.0  ;;  %v2070_v36 = vmul.f32 0.1, %v1870_v15 }
 0x214   : > { %v4085_v18 = vmax.f32 %v2262_v35, %v2265_v16  ;;  %v2465_v48 = vadd.f32 %v2464_v17, %v2463_v57  ;;  %vm1969_vm6 = vcmp.gt.f32.partialorder %v1869_v24, 0.0  ;;  %v2069_v60 = vmul.f32 0.1, %v1869_v24 }
 0x215   : > { %v1192_v52 = vpop.permute.xlu1 %1191  ;;  %v1188_v12 = vpop.permute.xlu0 %1187  ;;  %vm1972_vm7 = vcmp.gt.f32.partialorder %v1872_v41, 0.0  ;;  %v2072_v1 = vmul.f32 0.1, %v1872_v41  ;;  %vm1971_vm8 = vcmp.gt.f32.partialorder %v1871_v54, 0.0  ;;  %v2170_v34 = vsel %vm1970_vm5, %v1870_v15, %v2070_v36 }
 0x216   : > { %v2071_v22 = vmul.f32 0.1, %v1871_v54  ;;  %v1874_v44 = vadd.f32 %v3560_v21, %v1192_v52  ;;  %v1873_v45 = vadd.f32 %v3560_v21, %v1188_v12  ;;  %v2366_v39 = vsel %vm341_vm1, %v2170_v34, -inf }
 0x217   : > { %v2565_v59 = vsel %vm341_vm1, %v2170_v34, 0.0  ;;  %v2169_v31 = vsel %vm1969_vm6, %v1869_v24, %v2069_v60  ;;  %v2172_v25 = vsel %vm1972_vm7, %v1872_v41, %v2072_v1  ;;  %v2367_v9 = vmax.f32 %v4068_v8, %v2366_v39 }
 0x218   : > { %v2566_v5 = vadd.f32 %v2565_v59, %v2564_v6  ;;  %v2267_v58 = vsel %vm341_vm1, %v2169_v31, -inf  ;;  %v2466_v28 = vsel %vm341_vm1, %v2169_v31, 0.0  ;;  %v2368_v51 = vsel %vm341_vm1, %v2172_v25, -inf }
 0x219   : > { %v2268_v19 = vmax.f32 %v4073_v37, %v2267_v58  ;;  %v2467_v47 = vadd.f32 %v2466_v28, %v2465_v48  ;;  %v2567_v21 = vsel %vm341_vm1, %v2172_v25, 0.0  ;;  %v1203_v20 = vpop.permute.xlu1 %1202  ;;  %v2369_v38 = vmax.f32 %v4081_v50, %v2368_v51  ;;  %v1199_v3 = vpop.permute.xlu0 %1198 }
 0x21a   : > { %v2568_v46 = vadd.f32 %v2567_v21, %v2566_v5  ;;  %v2171_v55 = vsel %vm1971_vm8, %v1871_v54, %v2071_v22  ;;  %vm1974_vm9 = vcmp.gt.f32.partialorder %v1874_v44, 0.0  ;;  %v2074_v26 = vmul.f32 0.1, %v1874_v44 }
 0x21b   : > { %v2269_v33 = vsel %vm341_vm1, %v2171_v55, -inf  ;;  %v2468_v49 = vsel %vm341_vm1, %v2171_v55, 0.0  ;;  %vm1973_vm10 = vcmp.gt.f32.partialorder %v1873_v45, 0.0  ;;  %v2073_v14 = vmul.f32 0.1, %v1873_v45 }
 0x21c   : > { %v2270_v42 = vmax.f32 %v4085_v18, %v2269_v33  ;;  %v2469_v43 = vadd.f32 %v2468_v49, %v2467_v47  ;;  %v1876_v7 = vadd.f32 %v3573_v29, %v1203_v20  ;;  %v2174_v32 = vsel %vm1974_vm9, %v1874_v44, %v2074_v26 }
 0x21d   : > { %v1875_v35 = vadd.f32 %v3573_v29, %v1199_v3  ;;  %v2370_v4 = vsel %vm341_vm1, %v2174_v32, -inf  ;;  %v2569_v40 = vsel %vm341_vm1, %v2174_v32, 0.0  ;;  %v2173_v62 = vsel %vm1973_vm10, %v1873_v45, %v2073_v14 }
 0x21e   : > { %vm1976_vm11 = vcmp.gt.f32.partialorder %v1876_v7, 0.0  ;;  %v2371_v8 = vmax.f32 %v2367_v9, %v2370_v4  ;;  %v2570_v63 = vadd.f32 %v2569_v40, %v2568_v46  ;;  %v2271_v10 = vsel %vm341_vm1, %v2173_v62, -inf }
 0x21f   : > { %v2470_v2 = vsel %vm341_vm1, %v2173_v62, 0.0  ;;  %v2272_v11 = vmax.f32 %v2268_v19, %v2271_v10  ;;  %v2076_v37 = vmul.f32 0.1, %v1876_v7  ;;  %vm1975_vm12 = vcmp.gt.f32.partialorder %v1875_v35, 0.0 }
 0x220   : > { %v2471_v56 = vadd.f32 %v2470_v2, %v2469_v43  ;;  %v2075_v57 = vmul.f32 0.1, %v1875_v35 }
 0x221   : > { %v2176_v23 = vsel %vm1976_vm11, %v1876_v7, %v2076_v37 }
 0x222   : > { %v2372_v29 = vsel %vm341_vm1, %v2176_v23, -inf  ;;  %v2571_v15 = vsel %vm341_vm1, %v2176_v23, 0.0  ;;  %v2175_v0 = vsel %vm1975_vm12, %v1875_v35, %v2075_v57  ;;  %2576 = sbr.rel (%p2749_p4) target bundleno = 553 (0x229), region = 44 }
 0x223   : > { %v2373_v30 = vmax.f32 %v2369_v38, %v2372_v29  ;;  %v2572_v53 = vadd.f32 %v2571_v15, %v2570_v63  ;;  %v2273_v24 = vsel %vm341_vm1, %v2175_v0, -inf  ;;  %v2472_v41 = vsel %vm341_vm1, %v2175_v0, 0.0 }
 0x224   : > { %v2274_v54 = vmax.f32 %v2270_v42, %v2273_v24  ;;  %v2473_v27 = vadd.f32 %v2472_v41, %v2471_v56 }
 0x225   : > { %v2374_v13 = vmax.f32 %v2371_v8, %v2373_v30 }
 0x226   : > { %v2275_v61 = vmax.f32 %v2272_v11, %v2274_v54 }
 0x227   : > { %2578 = vst.msk [vmem:[#allocation2 + $0x8] sm:$0xff] %vm341_vm1, %v2374_v13  ;;  %2580 = vst.msk [vmem:[#allocation2 + $0x10] sm:$0xff] %vm341_vm1, %v2473_v27 }
 0x228   : > { %2577 = vst.msk [vmem:[#allocation2] sm:$0xff] %vm341_vm1, %v2275_v61  ;;  %2581 = vst.msk [vmem:[#allocation2 + $0x18] sm:$0xff] %vm341_vm1, %v2572_v53 }
 0x229 PF: > { %p2750_p5 = scmp.le.s32.totalorder %s2938_s25, 0 }
 0x22b   : > { %2585 = sbr.rel (%p2750_p5) target bundleno = 565 (0x235), region = 48 }
 0x230   : > { %v2586_v50 = vld [vmem:[#allocation2] sm:$0xff]  ;;  %v2587_v6 = vld [vmem:[#allocation2 + $0x8] sm:$0xff]  ;;  %v2593_v16 = vld [vmem:[#allocation2 + $0x10] sm:$0xff] }
 0x231   : > { %v2588_v17 = vmax.f32 %v2586_v50, %v2275_v61  ;;  %v2589_v18 = vmax.f32 %v2587_v6, %v2374_v13  ;;  %v2595_v48 = vadd.f32 %v2593_v16, %v2473_v27  ;;  %v2594_v36 = vld [vmem:[#allocation2 + $0x18] sm:$0xff] }
 0x232   : > { %v2596_v52 = vadd.f32 %v2594_v36, %v2572_v53 }
 0x233   : > { %2590 = vst.msk [vmem:[#allocation2] sm:$0xff] %vm341_vm1, %v2588_v17  ;;  %2591 = vst.msk [vmem:[#allocation2 + $0x8] sm:$0xff] %vm341_vm1, %v2589_v18 }
 0x234   : > { %2597 = vst.msk [vmem:[#allocation2 + $0x10] sm:$0xff] %vm341_vm1, %v2595_v48  ;;  %2598 = vst.msk [vmem:[#allocation2 + $0x18] sm:$0xff] %vm341_vm1, %v2596_v52 }
 0x235 PF: > { %p2751_p6 = scmp.ne.s32.totalorder %s2938_s25, 3 }
 0x237   : > { %2602 = sbr.rel (%p2751_p6) target bundleno = 576 (0x240), region = 52 }
 0x23c   : > { %v2604_v12 = vld [vmem:[#allocation2 + $0x10] sm:$0xff]  ;;  %v2605_v60 = vld [vmem:[#allocation2 + $0x18] sm:$0xff] }
 0x23d   : > { %v2606_v1 = vmul.f32 0.005, %v2604_v12  ;;  %v2607_v34 = vmul.f32 0.005, %v2605_v60 }
 0x23f   : > { %2608 = vst.msk [vmem:[#allocation2 + $0x10] sm:$0xff] %vm341_vm1, %v2606_v1  ;;  %2609 = vst.msk [vmem:[#allocation2 + $0x18] sm:$0xff] %vm341_vm1, %v2607_v34 }
 0x240 PF: > { %p2830_p7 = scmp.eq.s32.totalorder %s2938_s25, 3  ;;  %s2889_s10 = smov [#allocation2]  }
 0x241   : > { %s2632_s11 = sshll.u32 %s2889_s10, 4  ;;  %s2633_s11 = int_to_ptr.vmem [resolvable:$true] %s2632_s11 }
 0x242   : > { %s2849_s12 = scalar_lea.vmem %s2633_s11, 512  ;;  %p2856_p11 = scmp.lt.s32.totalorder %s2633_s11, %s2633_s11 }
 0x243   : > { %p2850_p8 = scmp.ne.s32.totalorder %s2633_s11, %s2849_s12  ;;  %p2857_p12 = scmp.lt.s32.totalorder %s2849_s12, %s2849_s12 }
 0x245   : > { %p2851_p9 = pnand %p2850_p8, %p2830_p7  ;;  %p2858_p13 = por %p2857_p12, %p2856_p11 }
 0x247   : > { %p2852_p10 = pneg %p2851_p9 }
 0x249   : > { %p2859_p0 = pnand %p2858_p13, %p2852_p10 }
 0x24b   : > { %2862 = shalt.err (!%p2859_p0)
}
 0x24c   : > { %s2890_s13 = smov 128   ;;  %s2891_s14 = smov 8  }
 0x24d   : > { %2827 = dma.vmem_to_hbm [thread:$0]  (%p2830_p7), %s2633_s11, 512, %s4147_s7, [#allocation3], %s2890_s13, %s2890_s13, %s2891_s14  }
 0x24e   : > { %2878 = dma.done.wait (%p2830_p7), [#allocation3], 512  }
 0x24f   : > { %2880 = vsyncadd (%p2830_p7), [#allocation3], 4294966784 }
 0x250 PF: > { %s19_s24 = sadd.s32 1, %s2883_s24  }
 0x251   : > { %p16_p1 = scmp.ge.s32.totalorder %s19_s24, 6  }
 0x253   :  { %18 = sbr.rel (!%p16_p1) target bundleno = 1 (0x1), region = 106 }
 0x258   :  { %2664 = vsyncpa [#allocation3], 1 }
 0x259   :  { %2666 = vsyncpa [#allocation3 + $0x1], 1 }

</bundles_post_ra>
